<compile_context>
chip_gen: v7x
topology: tpu7x:2x2x1
jax: 0.10.0
libtpu: 0.0.40
codegen_flags: <defaults>
</compile_context>

<pallas_src>
import functools
import math

import jax
import jax.numpy as jnp
from jax import lax
from jax.experimental import pallas as pl
from jax.experimental.pallas import tpu as pltpu

# ----------------------------- model config (small) -------------------------
IMAGE_DIM = 16        # small stand-in for the module's 224
PATCH = 4
EMBED = 32
NUM_HEADS = 4
HEAD_DIM = EMBED // NUM_HEADS
MLP_DIM = 64
NUM_LAYERS = 2
NUM_CLASSES = 8
LN_EPS = 1e-5

_PARALLEL = pltpu.CompilerParams(dimension_semantics=("parallel",))


# ----------------------------- in-kernel helpers -----------------------------
def _ln(x, g, b, eps):
    """LayerNorm over the last axis; statistics in f32."""
    xf = x.astype(jnp.float32)
    mean = jnp.mean(xf, axis=-1, keepdims=True)
    var = jnp.mean((xf - mean) ** 2, axis=-1, keepdims=True)
    inv = lax.rsqrt(var + eps)
    return (xf - mean) * inv * g + b


def _gelu_exact(y):
    # exact GELU (matches nn.GELU default): 0.5*x*(1+erf(x/sqrt(2)))
    return 0.5 * y * (1.0 + lax.erf(y * (1.0 / math.sqrt(2.0))))


# ----------------------------- Pallas kernels -------------------------------
def _patch_embed_kernel(p_ref, w_ref, b_ref, pos_ref, o_ref):
    """tokens = patches @ W + b + pos_embedding[1:]   (one batch per grid step)"""
    p = p_ref[0]                                                    # (N, C*p*p)
    tok = jnp.dot(p, w_ref[...], preferred_element_type=jnp.float32)
    tok = tok + b_ref[...] + pos_ref[0]
    o_ref[0] = tok.astype(o_ref.dtype)


def _attn_block_kernel(x_ref, g1_ref, b1_ref, wqkv_ref, bqkv_ref,
                       wo_ref, bo_ref, o_ref, *, num_heads, head_dim, eps):
    """Fused: LN1 -> QKV proj -> MHA (all heads) -> out proj -> +residual."""
    x = x_ref[0]                                                    # (S, E) f32
    h = _ln(x, g1_ref[...], b1_ref[...], eps)                       # (S, E)

    qkv = jnp.dot(h, wqkv_ref[...], preferred_element_type=jnp.float32)
    qkv = qkv + bqkv_ref[...]                                       # (S, 3E)
    E = num_heads * head_dim
    q = qkv[:, 0:E]
    k = qkv[:, E:2 * E]
    v = qkv[:, 2 * E:3 * E]

    scale = 1.0 / math.sqrt(head_dim)
    head_outs = []
    for hh in range(num_heads):                                     # static unroll
        lo = hh * head_dim
        hi = lo + head_dim
        qh = q[:, lo:hi] * scale                                    # (S, Dh)
        kh = k[:, lo:hi]
        vh = v[:, lo:hi]
        # QK^T: contract last dims directly (no materialized transpose).
        s = lax.dot_general(qh, kh, (((1,), (1,)), ((), ())),
                            preferred_element_type=jnp.float32)     # (S, S)
        s = s - jnp.max(s, axis=-1, keepdims=True)
        p = jnp.exp(s)
        denom = jnp.sum(p, axis=-1, keepdims=True)
        p = p * pl.reciprocal(denom, approx=True)
        head_outs.append(jnp.dot(p, vh, preferred_element_type=jnp.float32))
    attn = jnp.concatenate(head_outs, axis=-1)                      # (S, E)

    out = jnp.dot(attn, wo_ref[...], preferred_element_type=jnp.float32)
    out = out + bo_ref[...]
    o_ref[0] = (out + x).astype(o_ref.dtype)                        # residual


def _mlp_block_kernel(x_ref, g2_ref, b2_ref, w1_ref, bb1_ref,
                      w2_ref, bb2_ref, o_ref, *, eps):
    """Fused: LN2 -> Linear -> GELU -> Linear -> +residual."""
    x = x_ref[0]                                                    # (S, E)
    h = _ln(x, g2_ref[...], b2_ref[...], eps)
    y = jnp.dot(h, w1_ref[...], preferred_element_type=jnp.float32) + bb1_ref[...]
    y = _gelu_exact(y)
    y = jnp.dot(y, w2_ref[...], preferred_element_type=jnp.float32) + bb2_ref[...]
    o_ref[0] = (y + x).astype(o_ref.dtype)                          # residual


def _head_kernel(cls_ref, g_ref, b_ref, w_ref, hb_ref, o_ref, *, eps):
    """Fused final LayerNorm (cls rows only) + classifier head."""
    h = _ln(cls_ref[...], g_ref[...], b_ref[...], eps)              # (B, E)
    logits = jnp.dot(h, w_ref[...], preferred_element_type=jnp.float32) + hb_ref[...]
    o_ref[...] = logits.astype(o_ref.dtype)


# ----------------------------- kernel wrappers -------------------------------
def patch_embed(patches, w, b, pos_tok):
    B, N, Cpp = patches.shape
    E = w.shape[1]
    return pl.pallas_call(
        _patch_embed_kernel,
        out_shape=jax.ShapeDtypeStruct((B, N, E), patches.dtype),
        grid=(B,),
        in_specs=[
            pl.BlockSpec((1, N, Cpp), lambda i: (i, 0, 0)),
            pl.BlockSpec((Cpp, E), lambda i: (0, 0)),
            pl.BlockSpec((1, E), lambda i: (0, 0)),
            pl.BlockSpec((1, N, E), lambda i: (0, 0, 0)),
        ],
        out_specs=pl.BlockSpec((1, N, E), lambda i: (i, 0, 0)),
        compiler_params=_PARALLEL,
    )(patches, w, b.reshape(1, E), pos_tok)


def attn_block(x, g1, b1, wqkv, bqkv, wo, bo):
    B, S, E = x.shape
    kern = functools.partial(_attn_block_kernel, num_heads=NUM_HEADS,
                             head_dim=HEAD_DIM, eps=LN_EPS)
    return pl.pallas_call(
        kern,
        out_shape=jax.ShapeDtypeStruct((B, S, E), x.dtype),
        grid=(B,),
        in_specs=[
            pl.BlockSpec((1, S, E), lambda i: (i, 0, 0)),
            pl.BlockSpec((1, E), lambda i: (0, 0)),
            pl.BlockSpec((1, E), lambda i: (0, 0)),
            pl.BlockSpec((E, 3 * E), lambda i: (0, 0)),
            pl.BlockSpec((1, 3 * E), lambda i: (0, 0)),
            pl.BlockSpec((E, E), lambda i: (0, 0)),
            pl.BlockSpec((1, E), lambda i: (0, 0)),
        ],
        out_specs=pl.BlockSpec((1, S, E), lambda i: (i, 0, 0)),
        compiler_params=_PARALLEL,
    )(x, g1.reshape(1, E), b1.reshape(1, E),
      wqkv, bqkv.reshape(1, 3 * E), wo, bo.reshape(1, E))


def mlp_block(x, g2, b2, w1, bb1, w2, bb2):
    B, S, E = x.shape
    M = w1.shape[1]
    kern = functools.partial(_mlp_block_kernel, eps=LN_EPS)
    return pl.pallas_call(
        kern,
        out_shape=jax.ShapeDtypeStruct((B, S, E), x.dtype),
        grid=(B,),
        in_specs=[
            pl.BlockSpec((1, S, E), lambda i: (i, 0, 0)),
            pl.BlockSpec((1, E), lambda i: (0, 0)),
            pl.BlockSpec((1, E), lambda i: (0, 0)),
            pl.BlockSpec((E, M), lambda i: (0, 0)),
            pl.BlockSpec((1, M), lambda i: (0, 0)),
            pl.BlockSpec((M, E), lambda i: (0, 0)),
            pl.BlockSpec((1, E), lambda i: (0, 0)),
        ],
        out_specs=pl.BlockSpec((1, S, E), lambda i: (i, 0, 0)),
        compiler_params=_PARALLEL,
    )(x, g2.reshape(1, E), b2.reshape(1, E),
      w1, bb1.reshape(1, M), w2, bb2.reshape(1, E))


def final_head(cls_rows, g, b, hw, hb):
    B, E = cls_rows.shape
    C = hw.shape[1]
    kern = functools.partial(_head_kernel, eps=LN_EPS)
    return pl.pallas_call(
        kern,
        out_shape=jax.ShapeDtypeStruct((B, C), cls_rows.dtype),
        grid=(1,),
        in_specs=[
            pl.BlockSpec((B, E), lambda i: (0, 0)),
            pl.BlockSpec((1, E), lambda i: (0, 0)),
            pl.BlockSpec((1, E), lambda i: (0, 0)),
            pl.BlockSpec((E, C), lambda i: (0, 0)),
            pl.BlockSpec((1, C), lambda i: (0, 0)),
        ],
        out_specs=pl.BlockSpec((B, C), lambda i: (0, 0)),
    )(cls_rows, g.reshape(1, E), b.reshape(1, E), hw, hb.reshape(1, C))


# ----------------------------- parameter init -------------------------------
def init_params(key):
    ks = iter(jax.random.split(key, 8 + 12 * NUM_LAYERS))
    f32 = jnp.float32
    params = {}

    # patchify conv: weight (E, 3, p, p) -> matmul weight (3*p*p, E)
    fan_in = 3 * PATCH * PATCH
    w_conv = jax.random.truncated_normal(next(ks), -2.0, 2.0,
                                         (EMBED, 3, PATCH, PATCH), f32)
    w_conv = w_conv * math.sqrt(1.0 / fan_in)
    params["patch_w"] = w_conv.reshape(EMBED, fan_in).T          # (3*p*p, E)
    params["patch_b"] = jnp.zeros((EMBED,), f32)

    params["class_token"] = jnp.zeros((1, 1, EMBED), f32)
    seq_len = (IMAGE_DIM // PATCH) ** 2 + 1
    params["pos_embedding"] = 0.02 * jax.random.normal(next(ks), (1, seq_len, EMBED), f32)

    def xavier(k, shape):
        fi, fo = shape
        lim = math.sqrt(6.0 / (fi + fo))
        return jax.random.uniform(k, shape, f32, -lim, lim)

    blocks = []
    for _ in range(NUM_LAYERS):
        blk = {
            "ln1_g": jnp.ones((EMBED,), f32),
            "ln1_b": jnp.zeros((EMBED,), f32),
            "in_proj_w": xavier(next(ks), (EMBED, 3 * EMBED)),    # x @ W -> qkv
            "in_proj_b": jnp.zeros((3 * EMBED,), f32),
            "out_proj_w": xavier(next(ks), (EMBED, EMBED)),
            "out_proj_b": jnp.zeros((EMBED,), f32),
            "ln2_g": jnp.ones((EMBED,), f32),
            "ln2_b": jnp.zeros((EMBED,), f32),
            "mlp_w1": xavier(next(ks), (EMBED, MLP_DIM)),
            "mlp_b1": 1e-6 * jax.random.normal(next(ks), (MLP_DIM,), f32),
            "mlp_w2": xavier(next(ks), (MLP_DIM, EMBED)),
            "mlp_b2": 1e-6 * jax.random.normal(next(ks), (EMBED,), f32),
        }
        blocks.append(blk)
    params["blocks"] = blocks

    params["ln_g"] = jnp.ones((EMBED,), f32)
    params["ln_b"] = jnp.zeros((EMBED,), f32)
    # heads: initialized to zeros (as in the PyTorch module's init())
    params["head_w"] = jnp.zeros((EMBED, NUM_CLASSES), f32)
    params["head_b"] = jnp.zeros((NUM_CLASSES,), f32)
    return params


# ----------------------------- forward pass ---------------------------------
def vit_forward(params, x):
    # x: NCHW (B, 3, H, W)
    B, C, H, W = x.shape
    p = PATCH
    nh, nw = H // p, W // p
    n_patches = nh * nw

    # patch extraction (pure layout glue): (B, 3, H, W) -> (B, n_patches, 3*p*p)
    patches = x.reshape(B, C, nh, p, nw, p)
    patches = patches.transpose(0, 2, 4, 1, 3, 5).reshape(B, n_patches, C * p * p)

    pos = params["pos_embedding"]                   # (1, S, E)
    # Fused patchify-matmul + bias + pos-embedding (token positions 1..N).
    tok = patch_embed(patches, params["patch_w"], params["patch_b"], pos[:, 1:])

    cls = jnp.broadcast_to(params["class_token"] + pos[:, :1], (B, 1, EMBED))
    xseq = jnp.concatenate([cls, tok], axis=1)      # (B, S, E)

    for blk in params["blocks"]:
        # Fused: LN1 -> QKV -> MHA (all heads) -> out proj -> +residual
        xseq = attn_block(xseq, blk["ln1_g"], blk["ln1_b"],
                          blk["in_proj_w"], blk["in_proj_b"],
                          blk["out_proj_w"], blk["out_proj_b"])
        # Fused: LN2 -> MLP -> +residual
        xseq = mlp_block(xseq, blk["ln2_g"], blk["ln2_b"],
                         blk["mlp_w1"], blk["mlp_b1"],
                         blk["mlp_w2"], blk["mlp_b2"])

    # Final LayerNorm is per-token, so LN on cls row only == LN(all)[:, 0].
    cls_out = xseq[:, 0]                                            # (B, E)
    logits = final_head(cls_out, params["ln_g"], params["ln_b"],
                        params["head_w"], params["head_b"])         # (B, classes)
    return logits


# ----------------------------- main ------------------------------------------
if __name__ == "__main__":
    params = init_params(jax.random.PRNGKey(42))
    x = jax.random.normal(jax.random.PRNGKey(0),
                          (2, 3, IMAGE_DIM, IMAGE_DIM), jnp.float32)

    fwd = jax.jit(vit_forward)
    out = fwd(params, x)
    out = jax.block_until_ready(out)

    assert out.shape == (2, NUM_CLASSES), out.shape
    assert jnp.all(jnp.isfinite(out))
    print("KERNEL_OK")
</pallas_src>

<mosaic_0001>
module attributes {stable_mosaic.version = 11 : i64} {
  func.func @_attn_block_kernel(%arg0: i32, %arg1: memref<1x17x32xf32, #tpu.memory_space<vmem>>, %arg2: memref<1x32xf32, #tpu.memory_space<vmem>>, %arg3: memref<1x32xf32, #tpu.memory_space<vmem>>, %arg4: memref<32x96xf32, #tpu.memory_space<vmem>>, %arg5: memref<1x96xf32, #tpu.memory_space<vmem>>, %arg6: memref<32x32xf32, #tpu.memory_space<vmem>>, %arg7: memref<1x32xf32, #tpu.memory_space<vmem>>, %arg8: memref<1x17x32xf32, #tpu.memory_space<vmem>>) attributes {dimension_semantics = [#tpu.dimension_semantics<parallel>], iteration_bounds = array<i64: 2>, scalar_prefetch = 0 : i64, scratch_operands = 0 : i64, tpu.core_type = #tpu.core_type<tc>, window_params = [{transform_indices = @transform_0, window_bounds = array<i64: 1, 17, 32>}, {pipeline_mode = #tpu.pipeline_mode<synchronous>, transform_indices = @transform_1, window_bounds = array<i64: 1, 32>}, {pipeline_mode = #tpu.pipeline_mode<synchronous>, transform_indices = @transform_2, window_bounds = array<i64: 1, 32>}, {pipeline_mode = #tpu.pipeline_mode<synchronous>, transform_indices = @transform_3, window_bounds = array<i64: 32, 96>}, {pipeline_mode = #tpu.pipeline_mode<synchronous>, transform_indices = @transform_4, window_bounds = array<i64: 1, 96>}, {pipeline_mode = #tpu.pipeline_mode<synchronous>, transform_indices = @transform_5, window_bounds = array<i64: 32, 32>}, {pipeline_mode = #tpu.pipeline_mode<synchronous>, transform_indices = @transform_6, window_bounds = array<i64: 1, 32>}, {transform_indices = @transform_7, window_bounds = array<i64: 1, 17, 32>}]} {
    %c0 = arith.constant 0 : index
    %c0_0 = arith.constant 0 : index
    %c0_1 = arith.constant 0 : index
    %0 = vector.load %arg1[%c0, %c0_0, %c0_1] : memref<1x17x32xf32, #tpu.memory_space<vmem>>, vector<1x17x32xf32>
    %1 = vector.shape_cast %0 : vector<1x17x32xf32> to vector<17x32xf32>
    %c0_2 = arith.constant 0 : index
    %c0_3 = arith.constant 0 : index
    %2 = vector.load %arg2[%c0_2, %c0_3] : memref<1x32xf32, #tpu.memory_space<vmem>>, vector<1x32xf32>
    %c0_4 = arith.constant 0 : index
    %c0_5 = arith.constant 0 : index
    %3 = vector.load %arg3[%c0_4, %c0_5] : memref<1x32xf32, #tpu.memory_space<vmem>>, vector<1x32xf32>
    %cst = arith.constant dense<0.000000e+00> : vector<17xf32>
    %4 = vector.multi_reduction <add>, %1, %cst [1] : vector<17x32xf32> to vector<17xf32>
    %5 = vector.shape_cast %4 : vector<17xf32> to vector<17x1xf32>
    %cst_6 = arith.constant 3.200000e+01 : f32
    %6 = vector.broadcast %cst_6 : f32 to vector<17x1xf32>
    %7 = arith.divf %5, %6 : vector<17x1xf32>
    %8 = vector.broadcast %7 : vector<17x1xf32> to vector<17x32xf32>
    %9 = arith.subf %1, %8 : vector<17x32xf32>
    %10 = arith.mulf %9, %9 : vector<17x32xf32>
    %cst_7 = arith.constant dense<0.000000e+00> : vector<17xf32>
    %11 = vector.multi_reduction <add>, %10, %cst_7 [1] : vector<17x32xf32> to vector<17xf32>
    %12 = vector.shape_cast %11 : vector<17xf32> to vector<17x1xf32>
    %cst_8 = arith.constant 3.200000e+01 : f32
    %13 = vector.broadcast %cst_8 : f32 to vector<17x1xf32>
    %14 = arith.divf %12, %13 : vector<17x1xf32>
    %cst_9 = arith.constant 9.99999974E-6 : f32
    %15 = vector.broadcast %cst_9 : f32 to vector<17x1xf32>
    %16 = arith.addf %14, %15 : vector<17x1xf32>
    %17 = math.rsqrt %16 : vector<17x1xf32>
    %18 = vector.broadcast %7 : vector<17x1xf32> to vector<17x32xf32>
    %19 = arith.subf %1, %18 : vector<17x32xf32>
    %20 = vector.broadcast %17 : vector<17x1xf32> to vector<17x32xf32>
    %21 = arith.mulf %19, %20 : vector<17x32xf32>
    %22 = vector.broadcast %2 : vector<1x32xf32> to vector<17x32xf32>
    %23 = arith.mulf %21, %22 : vector<17x32xf32>
    %24 = vector.broadcast %3 : vector<1x32xf32> to vector<17x32xf32>
    %25 = arith.addf %23, %24 : vector<17x32xf32>
    %c0_10 = arith.constant 0 : index
    %c0_11 = arith.constant 0 : index
    %26 = vector.load %arg4[%c0_10, %c0_11] : memref<32x96xf32, #tpu.memory_space<vmem>>, vector<32x96xf32>
    %cst_12 = arith.constant dense<0.000000e+00> : vector<17x96xf32>
    %27 = tpu.matmul %25, %26, %cst_12 {dimension_numbers = #tpu.dot_dimension_numbers<[1], [0], [0], [1], [0, 0, 1, 1], [], []>} : vector<17x32xf32>, vector<32x96xf32>, vector<17x96xf32> -> vector<17x96xf32>
    %c0_13 = arith.constant 0 : index
    %c0_14 = arith.constant 0 : index
    %28 = vector.load %arg5[%c0_13, %c0_14] : memref<1x96xf32, #tpu.memory_space<vmem>>, vector<1x96xf32>
    %29 = vector.broadcast %28 : vector<1x96xf32> to vector<17x96xf32>
    %30 = arith.addf %27, %29 : vector<17x96xf32>
    %31 = vector.extract_strided_slice %30 {offsets = [0, 0], sizes = [17, 32], strides = [1, 1]} : vector<17x96xf32> to vector<17x32xf32>
    %32 = vector.extract_strided_slice %30 {offsets = [0, 32], sizes = [17, 32], strides = [1, 1]} : vector<17x96xf32> to vector<17x32xf32>
    %33 = vector.extract_strided_slice %30 {offsets = [0, 64], sizes = [17, 32], strides = [1, 1]} : vector<17x96xf32> to vector<17x32xf32>
    %34 = vector.extract_strided_slice %31 {offsets = [0, 0], sizes = [17, 8], strides = [1, 1]} : vector<17x32xf32> to vector<17x8xf32>
    %cst_15 = arith.constant 0.353553385 : f32
    %35 = vector.broadcast %cst_15 : f32 to vector<17x8xf32>
    %36 = arith.mulf %34, %35 : vector<17x8xf32>
    %37 = vector.extract_strided_slice %32 {offsets = [0, 0], sizes = [17, 8], strides = [1, 1]} : vector<17x32xf32> to vector<17x8xf32>
    %38 = vector.extract_strided_slice %33 {offsets = [0, 0], sizes = [17, 8], strides = [1, 1]} : vector<17x32xf32> to vector<17x8xf32>
    %cst_16 = arith.constant dense<0.000000e+00> : vector<17x17xf32>
    %39 = tpu.matmul %36, %37, %cst_16 {dimension_numbers = #tpu.dot_dimension_numbers<[1], [1], [0], [0], [0, 0, 1, 0], [], []>} : vector<17x8xf32>, vector<17x8xf32>, vector<17x17xf32> -> vector<17x17xf32>
    %cst_17 = arith.constant dense<0xFF800000> : vector<17xf32>
    %40 = vector.multi_reduction <maximumf>, %39, %cst_17 [1] : vector<17x17xf32> to vector<17xf32>
    %41 = vector.shape_cast %40 : vector<17xf32> to vector<17x1xf32>
    %42 = vector.broadcast %41 : vector<17x1xf32> to vector<17x17xf32>
    %43 = arith.subf %39, %42 : vector<17x17xf32>
    %44 = math.exp %43 : vector<17x17xf32>
    %cst_18 = arith.constant dense<0.000000e+00> : vector<17xf32>
    %45 = vector.multi_reduction <add>, %44, %cst_18 [1] : vector<17x17xf32> to vector<17xf32>
    %46 = vector.shape_cast %45 : vector<17xf32> to vector<17x1xf32>
    %47 = tpu.reciprocal %46 {approx = true} : vector<17x1xf32> -> vector<17x1xf32>
    %48 = vector.broadcast %47 : vector<17x1xf32> to vector<17x17xf32>
    %49 = arith.mulf %44, %48 : vector<17x17xf32>
    %cst_19 = arith.constant dense<0.000000e+00> : vector<17x8xf32>
    %50 = tpu.matmul %49, %38, %cst_19 {dimension_numbers = #tpu.dot_dimension_numbers<[1], [0], [0], [1], [0, 0, 1, 1], [], []>} : vector<17x17xf32>, vector<17x8xf32>, vector<17x8xf32> -> vector<17x8xf32>
    %51 = vector.extract_strided_slice %31 {offsets = [0, 8], sizes = [17, 8], strides = [1, 1]} : vector<17x32xf32> to vector<17x8xf32>
    %cst_20 = arith.constant 0.353553385 : f32
    %52 = vector.broadcast %cst_20 : f32 to vector<17x8xf32>
    %53 = arith.mulf %51, %52 : vector<17x8xf32>
    %54 = vector.extract_strided_slice %32 {offsets = [0, 8], sizes = [17, 8], strides = [1, 1]} : vector<17x32xf32> to vector<17x8xf32>
    %55 = vector.extract_strided_slice %33 {offsets = [0, 8], sizes = [17, 8], strides = [1, 1]} : vector<17x32xf32> to vector<17x8xf32>
    %cst_21 = arith.constant dense<0.000000e+00> : vector<17x17xf32>
    %56 = tpu.matmul %53, %54, %cst_21 {dimension_numbers = #tpu.dot_dimension_numbers<[1], [1], [0], [0], [0, 0, 1, 0], [], []>} : vector<17x8xf32>, vector<17x8xf32>, vector<17x17xf32> -> vector<17x17xf32>
    %cst_22 = arith.constant dense<0xFF800000> : vector<17xf32>
    %57 = vector.multi_reduction <maximumf>, %56, %cst_22 [1] : vector<17x17xf32> to vector<17xf32>
    %58 = vector.shape_cast %57 : vector<17xf32> to vector<17x1xf32>
    %59 = vector.broadcast %58 : vector<17x1xf32> to vector<17x17xf32>
    %60 = arith.subf %56, %59 : vector<17x17xf32>
    %61 = math.exp %60 : vector<17x17xf32>
    %cst_23 = arith.constant dense<0.000000e+00> : vector<17xf32>
    %62 = vector.multi_reduction <add>, %61, %cst_23 [1] : vector<17x17xf32> to vector<17xf32>
    %63 = vector.shape_cast %62 : vector<17xf32> to vector<17x1xf32>
    %64 = tpu.reciprocal %63 {approx = true} : vector<17x1xf32> -> vector<17x1xf32>
    %65 = vector.broadcast %64 : vector<17x1xf32> to vector<17x17xf32>
    %66 = arith.mulf %61, %65 : vector<17x17xf32>
    %cst_24 = arith.constant dense<0.000000e+00> : vector<17x8xf32>
    %67 = tpu.matmul %66, %55, %cst_24 {dimension_numbers = #tpu.dot_dimension_numbers<[1], [0], [0], [1], [0, 0, 1, 1], [], []>} : vector<17x17xf32>, vector<17x8xf32>, vector<17x8xf32> -> vector<17x8xf32>
    %68 = vector.extract_strided_slice %31 {offsets = [0, 16], sizes = [17, 8], strides = [1, 1]} : vector<17x32xf32> to vector<17x8xf32>
    %cst_25 = arith.constant 0.353553385 : f32
    %69 = vector.broadcast %cst_25 : f32 to vector<17x8xf32>
    %70 = arith.mulf %68, %69 : vector<17x8xf32>
    %71 = vector.extract_strided_slice %32 {offsets = [0, 16], sizes = [17, 8], strides = [1, 1]} : vector<17x32xf32> to vector<17x8xf32>
    %72 = vector.extract_strided_slice %33 {offsets = [0, 16], sizes = [17, 8], strides = [1, 1]} : vector<17x32xf32> to vector<17x8xf32>
    %cst_26 = arith.constant dense<0.000000e+00> : vector<17x17xf32>
    %73 = tpu.matmul %70, %71, %cst_26 {dimension_numbers = #tpu.dot_dimension_numbers<[1], [1], [0], [0], [0, 0, 1, 0], [], []>} : vector<17x8xf32>, vector<17x8xf32>, vector<17x17xf32> -> vector<17x17xf32>
    %cst_27 = arith.constant dense<0xFF800000> : vector<17xf32>
    %74 = vector.multi_reduction <maximumf>, %73, %cst_27 [1] : vector<17x17xf32> to vector<17xf32>
    %75 = vector.shape_cast %74 : vector<17xf32> to vector<17x1xf32>
    %76 = vector.broadcast %75 : vector<17x1xf32> to vector<17x17xf32>
    %77 = arith.subf %73, %76 : vector<17x17xf32>
    %78 = math.exp %77 : vector<17x17xf32>
    %cst_28 = arith.constant dense<0.000000e+00> : vector<17xf32>
    %79 = vector.multi_reduction <add>, %78, %cst_28 [1] : vector<17x17xf32> to vector<17xf32>
    %80 = vector.shape_cast %79 : vector<17xf32> to vector<17x1xf32>
    %81 = tpu.reciprocal %80 {approx = true} : vector<17x1xf32> -> vector<17x1xf32>
    %82 = vector.broadcast %81 : vector<17x1xf32> to vector<17x17xf32>
    %83 = arith.mulf %78, %82 : vector<17x17xf32>
    %cst_29 = arith.constant dense<0.000000e+00> : vector<17x8xf32>
    %84 = tpu.matmul %83, %72, %cst_29 {dimension_numbers = #tpu.dot_dimension_numbers<[1], [0], [0], [1], [0, 0, 1, 1], [], []>} : vector<17x17xf32>, vector<17x8xf32>, vector<17x8xf32> -> vector<17x8xf32>
    %85 = vector.extract_strided_slice %31 {offsets = [0, 24], sizes = [17, 8], strides = [1, 1]} : vector<17x32xf32> to vector<17x8xf32>
    %cst_30 = arith.constant 0.353553385 : f32
    %86 = vector.broadcast %cst_30 : f32 to vector<17x8xf32>
    %87 = arith.mulf %85, %86 : vector<17x8xf32>
    %88 = vector.extract_strided_slice %32 {offsets = [0, 24], sizes = [17, 8], strides = [1, 1]} : vector<17x32xf32> to vector<17x8xf32>
    %89 = vector.extract_strided_slice %33 {offsets = [0, 24], sizes = [17, 8], strides = [1, 1]} : vector<17x32xf32> to vector<17x8xf32>
    %cst_31 = arith.constant dense<0.000000e+00> : vector<17x17xf32>
    %90 = tpu.matmul %87, %88, %cst_31 {dimension_numbers = #tpu.dot_dimension_numbers<[1], [1], [0], [0], [0, 0, 1, 0], [], []>} : vector<17x8xf32>, vector<17x8xf32>, vector<17x17xf32> -> vector<17x17xf32>
    %cst_32 = arith.constant dense<0xFF800000> : vector<17xf32>
    %91 = vector.multi_reduction <maximumf>, %90, %cst_32 [1] : vector<17x17xf32> to vector<17xf32>
    %92 = vector.shape_cast %91 : vector<17xf32> to vector<17x1xf32>
    %93 = vector.broadcast %92 : vector<17x1xf32> to vector<17x17xf32>
    %94 = arith.subf %90, %93 : vector<17x17xf32>
    %95 = math.exp %94 : vector<17x17xf32>
    %cst_33 = arith.constant dense<0.000000e+00> : vector<17xf32>
    %96 = vector.multi_reduction <add>, %95, %cst_33 [1] : vector<17x17xf32> to vector<17xf32>
    %97 = vector.shape_cast %96 : vector<17xf32> to vector<17x1xf32>
    %98 = tpu.reciprocal %97 {approx = true} : vector<17x1xf32> -> vector<17x1xf32>
    %99 = vector.broadcast %98 : vector<17x1xf32> to vector<17x17xf32>
    %100 = arith.mulf %95, %99 : vector<17x17xf32>
    %cst_34 = arith.constant dense<0.000000e+00> : vector<17x8xf32>
    %101 = tpu.matmul %100, %89, %cst_34 {dimension_numbers = #tpu.dot_dimension_numbers<[1], [0], [0], [1], [0, 0, 1, 1], [], []>} : vector<17x17xf32>, vector<17x8xf32>, vector<17x8xf32> -> vector<17x8xf32>
    %102 = tpu.concatenate %50, %67, %84, %101 in 1 : vector<17x8xf32>, vector<17x8xf32>, vector<17x8xf32>, vector<17x8xf32> -> vector<17x32xf32>
    %c0_35 = arith.constant 0 : index
    %c0_36 = arith.constant 0 : index
    %103 = vector.load %arg6[%c0_35, %c0_36] : memref<32x32xf32, #tpu.memory_space<vmem>>, vector<32x32xf32>
    %cst_37 = arith.constant dense<0.000000e+00> : vector<17x32xf32>
    %104 = tpu.matmul %102, %103, %cst_37 {dimension_numbers = #tpu.dot_dimension_numbers<[1], [0], [0], [1], [0, 0, 1, 1], [], []>} : vector<17x32xf32>, vector<32x32xf32>, vector<17x32xf32> -> vector<17x32xf32>
    %c0_38 = arith.constant 0 : index
    %c0_39 = arith.constant 0 : index
    %105 = vector.load %arg7[%c0_38, %c0_39] : memref<1x32xf32, #tpu.memory_space<vmem>>, vector<1x32xf32>
    %106 = vector.broadcast %105 : vector<1x32xf32> to vector<17x32xf32>
    %107 = arith.addf %104, %106 : vector<17x32xf32>
    %108 = arith.addf %107, %1 : vector<17x32xf32>
    %c0_40 = arith.constant 0 : index
    %c0_41 = arith.constant 0 : index
    %c0_42 = arith.constant 0 : index
    %109 = vector.load %arg8[%c0_40, %c0_41, %c0_42] : memref<1x17x32xf32, #tpu.memory_space<vmem>>, vector<1x17x32xf32>
    %110 = vector.shape_cast %109 : vector<1x17x32xf32> to vector<17x32xf32>
    %111 = vector.shape_cast %108 : vector<17x32xf32> to vector<1x17x32xf32>
    tpu.vector_store %arg8[%c0_40, %c0_41, %c0_42], %111 {strides = array<i32>} : memref<1x17x32xf32, #tpu.memory_space<vmem>>, vector<1x17x32xf32>,
    return
  }
  func.func @transform_0(%arg0: i32) -> (i32, i32, i32) {
    %c0_i32 = arith.constant 0 : i32
    %c0_i32_0 = arith.constant 0 : i32
    %c0_i32_1 = arith.constant 0 : i32
    return %arg0, %c0_i32, %c0_i32_0 : i32, i32, i32
  }
  func.func @transform_1(%arg0: i32) -> (i32, i32) {
    %c0_i32 = arith.constant 0 : i32
    %c0_i32_0 = arith.constant 0 : i32
    %c0_i32_1 = arith.constant 0 : i32
    return %c0_i32, %c0_i32_0 : i32, i32
  }
  func.func @transform_2(%arg0: i32) -> (i32, i32) {
    %c0_i32 = arith.constant 0 : i32
    %c0_i32_0 = arith.constant 0 : i32
    %c0_i32_1 = arith.constant 0 : i32
    return %c0_i32, %c0_i32_0 : i32, i32
  }
  func.func @transform_3(%arg0: i32) -> (i32, i32) {
    %c0_i32 = arith.constant 0 : i32
    %c0_i32_0 = arith.constant 0 : i32
    %c0_i32_1 = arith.constant 0 : i32
    return %c0_i32, %c0_i32_0 : i32, i32
  }
  func.func @transform_4(%arg0: i32) -> (i32, i32) {
    %c0_i32 = arith.constant 0 : i32
    %c0_i32_0 = arith.constant 0 : i32
    %c0_i32_1 = arith.constant 0 : i32
    return %c0_i32, %c0_i32_0 : i32, i32
  }
  func.func @transform_5(%arg0: i32) -> (i32, i32) {
    %c0_i32 = arith.constant 0 : i32
    %c0_i32_0 = arith.constant 0 : i32
    %c0_i32_1 = arith.constant 0 : i32
    return %c0_i32, %c0_i32_0 : i32, i32
  }
  func.func @transform_6(%arg0: i32) -> (i32, i32) {
    %c0_i32 = arith.constant 0 : i32
    %c0_i32_0 = arith.constant 0 : i32
    %c0_i32_1 = arith.constant 0 : i32
    return %c0_i32, %c0_i32_0 : i32, i32
  }
  func.func @transform_7(%arg0: i32) -> (i32, i32, i32) {
    %c0_i32 = arith.constant 0 : i32
    %c0_i32_0 = arith.constant 0 : i32
    %c0_i32_1 = arith.constant 0 : i32
    return %arg0, %c0_i32, %c0_i32_0 : i32, i32, i32
  }
}

module attributes {stable_mosaic.version = 11 : i64} {
  func.func @_patch_embed_kernel(%arg0: i32, %arg1: memref<1x16x48xf32, #tpu.memory_space<vmem>>, %arg2: memref<48x32xf32, #tpu.memory_space<vmem>>, %arg3: memref<1x32xf32, #tpu.memory_space<vmem>>, %arg4: memref<1x16x32xf32, #tpu.memory_space<vmem>>, %arg5: memref<1x16x32xf32, #tpu.memory_space<vmem>>) attributes {dimension_semantics = [#tpu.dimension_semantics<parallel>], iteration_bounds = array<i64: 2>, scalar_prefetch = 0 : i64, scratch_operands = 0 : i64, tpu.core_type = #tpu.core_type<tc>, window_params = [{transform_indices = @transform_0, window_bounds = array<i64: 1, 16, 48>}, {pipeline_mode = #tpu.pipeline_mode<synchronous>, transform_indices = @transform_1, window_bounds = array<i64: 48, 32>}, {pipeline_mode = #tpu.pipeline_mode<synchronous>, transform_indices = @transform_2, window_bounds = array<i64: 1, 32>}, {pipeline_mode = #tpu.pipeline_mode<synchronous>, transform_indices = @transform_3, window_bounds = array<i64: 1, 16, 32>}, {transform_indices = @transform_4, window_bounds = array<i64: 1, 16, 32>}]} {
    %c0 = arith.constant 0 : index
    %c0_0 = arith.constant 0 : index
    %c0_1 = arith.constant 0 : index
    %0 = vector.load %arg1[%c0, %c0_0, %c0_1] : memref<1x16x48xf32, #tpu.memory_space<vmem>>, vector<1x16x48xf32>
    %1 = vector.shape_cast %0 : vector<1x16x48xf32> to vector<16x48xf32>
    %c0_2 = arith.constant 0 : index
    %c0_3 = arith.constant 0 : index
    %2 = vector.load %arg2[%c0_2, %c0_3] : memref<48x32xf32, #tpu.memory_space<vmem>>, vector<48x32xf32>
    %cst = arith.constant dense<0.000000e+00> : vector<16x32xf32>
    %3 = tpu.matmul %1, %2, %cst {dimension_numbers = #tpu.dot_dimension_numbers<[1], [0], [0], [1], [0, 0, 1, 1], [], []>} : vector<16x48xf32>, vector<48x32xf32>, vector<16x32xf32> -> vector<16x32xf32>
    %c0_4 = arith.constant 0 : index
    %c0_5 = arith.constant 0 : index
    %4 = vector.load %arg3[%c0_4, %c0_5] : memref<1x32xf32, #tpu.memory_space<vmem>>, vector<1x32xf32>
    %5 = vector.broadcast %4 : vector<1x32xf32> to vector<16x32xf32>
    %6 = arith.addf %3, %5 : vector<16x32xf32>
    %c0_6 = arith.constant 0 : index
    %c0_7 = arith.constant 0 : index
    %c0_8 = arith.constant 0 : index
    %7 = vector.load %arg4[%c0_6, %c0_7, %c0_8] : memref<1x16x32xf32, #tpu.memory_space<vmem>>, vector<1x16x32xf32>
    %8 = vector.shape_cast %7 : vector<1x16x32xf32> to vector<16x32xf32>
    %9 = arith.addf %6, %8 : vector<16x32xf32>
    %c0_9 = arith.constant 0 : index
    %c0_10 = arith.constant 0 : index
    %c0_11 = arith.constant 0 : index
    %10 = vector.load %arg5[%c0_9, %c0_10, %c0_11] : memref<1x16x32xf32, #tpu.memory_space<vmem>>, vector<1x16x32xf32>
    %11 = vector.shape_cast %10 : vector<1x16x32xf32> to vector<16x32xf32>
    %12 = vector.shape_cast %9 : vector<16x32xf32> to vector<1x16x32xf32>
    tpu.vector_store %arg5[%c0_9, %c0_10, %c0_11], %12 {strides = array<i32>} : memref<1x16x32xf32, #tpu.memory_space<vmem>>, vector<1x16x32xf32>,
    return
  }
  func.func @transform_0(%arg0: i32) -> (i32, i32, i32) {
    %c0_i32 = arith.constant 0 : i32
    %c0_i32_0 = arith.constant 0 : i32
    %c0_i32_1 = arith.constant 0 : i32
    return %arg0, %c0_i32, %c0_i32_0 : i32, i32, i32
  }
  func.func @transform_1(%arg0: i32) -> (i32, i32) {
    %c0_i32 = arith.constant 0 : i32
    %c0_i32_0 = arith.constant 0 : i32
    %c0_i32_1 = arith.constant 0 : i32
    return %c0_i32, %c0_i32_0 : i32, i32
  }
  func.func @transform_2(%arg0: i32) -> (i32, i32) {
    %c0_i32 = arith.constant 0 : i32
    %c0_i32_0 = arith.constant 0 : i32
    %c0_i32_1 = arith.constant 0 : i32
    return %c0_i32, %c0_i32_0 : i32, i32
  }
  func.func @transform_3(%arg0: i32) -> (i32, i32, i32) {
    %c0_i32 = arith.constant 0 : i32
    %c0_i32_0 = arith.constant 0 : i32
    %c0_i32_1 = arith.constant 0 : i32
    %c0_i32_2 = arith.constant 0 : i32
    return %c0_i32, %c0_i32_0, %c0_i32_1 : i32, i32, i32
  }
  func.func @transform_4(%arg0: i32) -> (i32, i32, i32) {
    %c0_i32 = arith.constant 0 : i32
    %c0_i32_0 = arith.constant 0 : i32
    %c0_i32_1 = arith.constant 0 : i32
    return %arg0, %c0_i32, %c0_i32_0 : i32, i32, i32
  }
}

module attributes {stable_mosaic.version = 11 : i64} {
  func.func @_mlp_block_kernel(%arg0: i32, %arg1: memref<1x17x32xf32, #tpu.memory_space<vmem>>, %arg2: memref<1x32xf32, #tpu.memory_space<vmem>>, %arg3: memref<1x32xf32, #tpu.memory_space<vmem>>, %arg4: memref<32x64xf32, #tpu.memory_space<vmem>>, %arg5: memref<1x64xf32, #tpu.memory_space<vmem>>, %arg6: memref<64x32xf32, #tpu.memory_space<vmem>>, %arg7: memref<1x32xf32, #tpu.memory_space<vmem>>, %arg8: memref<1x17x32xf32, #tpu.memory_space<vmem>>) attributes {dimension_semantics = [#tpu.dimension_semantics<parallel>], iteration_bounds = array<i64: 2>, scalar_prefetch = 0 : i64, scratch_operands = 0 : i64, tpu.core_type = #tpu.core_type<tc>, window_params = [{transform_indices = @transform_0, window_bounds = array<i64: 1, 17, 32>}, {pipeline_mode = #tpu.pipeline_mode<synchronous>, transform_indices = @transform_1, window_bounds = array<i64: 1, 32>}, {pipeline_mode = #tpu.pipeline_mode<synchronous>, transform_indices = @transform_2, window_bounds = array<i64: 1, 32>}, {pipeline_mode = #tpu.pipeline_mode<synchronous>, transform_indices = @transform_3, window_bounds = array<i64: 32, 64>}, {pipeline_mode = #tpu.pipeline_mode<synchronous>, transform_indices = @transform_4, window_bounds = array<i64: 1, 64>}, {pipeline_mode = #tpu.pipeline_mode<synchronous>, transform_indices = @transform_5, window_bounds = array<i64: 64, 32>}, {pipeline_mode = #tpu.pipeline_mode<synchronous>, transform_indices = @transform_6, window_bounds = array<i64: 1, 32>}, {transform_indices = @transform_7, window_bounds = array<i64: 1, 17, 32>}]} {
    %c0 = arith.constant 0 : index
    %c0_0 = arith.constant 0 : index
    %c0_1 = arith.constant 0 : index
    %0 = vector.load %arg1[%c0, %c0_0, %c0_1] : memref<1x17x32xf32, #tpu.memory_space<vmem>>, vector<1x17x32xf32>
    %1 = vector.shape_cast %0 : vector<1x17x32xf32> to vector<17x32xf32>
    %c0_2 = arith.constant 0 : index
    %c0_3 = arith.constant 0 : index
    %2 = vector.load %arg2[%c0_2, %c0_3] : memref<1x32xf32, #tpu.memory_space<vmem>>, vector<1x32xf32>
    %c0_4 = arith.constant 0 : index
    %c0_5 = arith.constant 0 : index
    %3 = vector.load %arg3[%c0_4, %c0_5] : memref<1x32xf32, #tpu.memory_space<vmem>>, vector<1x32xf32>
    %cst = arith.constant dense<0.000000e+00> : vector<17xf32>
    %4 = vector.multi_reduction <add>, %1, %cst [1] : vector<17x32xf32> to vector<17xf32>
    %5 = vector.shape_cast %4 : vector<17xf32> to vector<17x1xf32>
    %cst_6 = arith.constant 3.200000e+01 : f32
    %6 = vector.broadcast %cst_6 : f32 to vector<17x1xf32>
    %7 = arith.divf %5, %6 : vector<17x1xf32>
    %8 = vector.broadcast %7 : vector<17x1xf32> to vector<17x32xf32>
    %9 = arith.subf %1, %8 : vector<17x32xf32>
    %10 = arith.mulf %9, %9 : vector<17x32xf32>
    %cst_7 = arith.constant dense<0.000000e+00> : vector<17xf32>
    %11 = vector.multi_reduction <add>, %10, %cst_7 [1] : vector<17x32xf32> to vector<17xf32>
    %12 = vector.shape_cast %11 : vector<17xf32> to vector<17x1xf32>
    %cst_8 = arith.constant 3.200000e+01 : f32
    %13 = vector.broadcast %cst_8 : f32 to vector<17x1xf32>
    %14 = arith.divf %12, %13 : vector<17x1xf32>
    %cst_9 = arith.constant 9.99999974E-6 : f32
    %15 = vector.broadcast %cst_9 : f32 to vector<17x1xf32>
    %16 = arith.addf %14, %15 : vector<17x1xf32>
    %17 = math.rsqrt %16 : vector<17x1xf32>
    %18 = vector.broadcast %7 : vector<17x1xf32> to vector<17x32xf32>
    %19 = arith.subf %1, %18 : vector<17x32xf32>
    %20 = vector.broadcast %17 : vector<17x1xf32> to vector<17x32xf32>
    %21 = arith.mulf %19, %20 : vector<17x32xf32>
    %22 = vector.broadcast %2 : vector<1x32xf32> to vector<17x32xf32>
    %23 = arith.mulf %21, %22 : vector<17x32xf32>
    %24 = vector.broadcast %3 : vector<1x32xf32> to vector<17x32xf32>
    %25 = arith.addf %23, %24 : vector<17x32xf32>
    %c0_10 = arith.constant 0 : index
    %c0_11 = arith.constant 0 : index
    %26 = vector.load %arg4[%c0_10, %c0_11] : memref<32x64xf32, #tpu.memory_space<vmem>>, vector<32x64xf32>
    %cst_12 = arith.constant dense<0.000000e+00> : vector<17x64xf32>
    %27 = tpu.matmul %25, %26, %cst_12 {dimension_numbers = #tpu.dot_dimension_numbers<[1], [0], [0], [1], [0, 0, 1, 1], [], []>} : vector<17x32xf32>, vector<32x64xf32>, vector<17x64xf32> -> vector<17x64xf32>
    %c0_13 = arith.constant 0 : index
    %c0_14 = arith.constant 0 : index
    %28 = vector.load %arg5[%c0_13, %c0_14] : memref<1x64xf32, #tpu.memory_space<vmem>>, vector<1x64xf32>
    %29 = vector.broadcast %28 : vector<1x64xf32> to vector<17x64xf32>
    %30 = arith.addf %27, %29 : vector<17x64xf32>
    %cst_15 = arith.constant 5.000000e-01 : f32
    %31 = vector.broadcast %cst_15 : f32 to vector<17x64xf32>
    %32 = arith.mulf %31, %30 : vector<17x64xf32>
    %cst_16 = arith.constant 0.707106769 : f32
    %33 = vector.broadcast %cst_16 : f32 to vector<17x64xf32>
    %34 = arith.mulf %30, %33 : vector<17x64xf32>
    %35 = math.erf %34 : vector<17x64xf32>
    %cst_17 = arith.constant 1.000000e+00 : f32
    %36 = vector.broadcast %cst_17 : f32 to vector<17x64xf32>
    %37 = arith.addf %36, %35 : vector<17x64xf32>
    %38 = arith.mulf %32, %37 : vector<17x64xf32>
    %c0_18 = arith.constant 0 : index
    %c0_19 = arith.constant 0 : index
    %39 = vector.load %arg6[%c0_18, %c0_19] : memref<64x32xf32, #tpu.memory_space<vmem>>, vector<64x32xf32>
    %cst_20 = arith.constant dense<0.000000e+00> : vector<17x32xf32>
    %40 = tpu.matmul %38, %39, %cst_20 {dimension_numbers = #tpu.dot_dimension_numbers<[1], [0], [0], [1], [0, 0, 1, 1], [], []>} : vector<17x64xf32>, vector<64x32xf32>, vector<17x32xf32> -> vector<17x32xf32>
    %c0_21 = arith.constant 0 : index
    %c0_22 = arith.constant 0 : index
    %41 = vector.load %arg7[%c0_21, %c0_22] : memref<1x32xf32, #tpu.memory_space<vmem>>, vector<1x32xf32>
    %42 = vector.broadcast %41 : vector<1x32xf32> to vector<17x32xf32>
    %43 = arith.addf %40, %42 : vector<17x32xf32>
    %44 = arith.addf %43, %1 : vector<17x32xf32>
    %c0_23 = arith.constant 0 : index
    %c0_24 = arith.constant 0 : index
    %c0_25 = arith.constant 0 : index
    %45 = vector.load %arg8[%c0_23, %c0_24, %c0_25] : memref<1x17x32xf32, #tpu.memory_space<vmem>>, vector<1x17x32xf32>
    %46 = vector.shape_cast %45 : vector<1x17x32xf32> to vector<17x32xf32>
    %47 = vector.shape_cast %44 : vector<17x32xf32> to vector<1x17x32xf32>
    tpu.vector_store %arg8[%c0_23, %c0_24, %c0_25], %47 {strides = array<i32>} : memref<1x17x32xf32, #tpu.memory_space<vmem>>, vector<1x17x32xf32>,
    return
  }
  func.func @transform_0(%arg0: i32) -> (i32, i32, i32) {
    %c0_i32 = arith.constant 0 : i32
    %c0_i32_0 = arith.constant 0 : i32
    %c0_i32_1 = arith.constant 0 : i32
    return %arg0, %c0_i32, %c0_i32_0 : i32, i32, i32
  }
  func.func @transform_1(%arg0: i32) -> (i32, i32) {
    %c0_i32 = arith.constant 0 : i32
    %c0_i32_0 = arith.constant 0 : i32
    %c0_i32_1 = arith.constant 0 : i32
    return %c0_i32, %c0_i32_0 : i32, i32
  }
  func.func @transform_2(%arg0: i32) -> (i32, i32) {
    %c0_i32 = arith.constant 0 : i32
    %c0_i32_0 = arith.constant 0 : i32
    %c0_i32_1 = arith.constant 0 : i32
    return %c0_i32, %c0_i32_0 : i32, i32
  }
  func.func @transform_3(%arg0: i32) -> (i32, i32) {
    %c0_i32 = arith.constant 0 : i32
    %c0_i32_0 = arith.constant 0 : i32
    %c0_i32_1 = arith.constant 0 : i32
    return %c0_i32, %c0_i32_0 : i32, i32
  }
  func.func @transform_4(%arg0: i32) -> (i32, i32) {
    %c0_i32 = arith.constant 0 : i32
    %c0_i32_0 = arith.constant 0 : i32
    %c0_i32_1 = arith.constant 0 : i32
    return %c0_i32, %c0_i32_0 : i32, i32
  }
  func.func @transform_5(%arg0: i32) -> (i32, i32) {
    %c0_i32 = arith.constant 0 : i32
    %c0_i32_0 = arith.constant 0 : i32
    %c0_i32_1 = arith.constant 0 : i32
    return %c0_i32, %c0_i32_0 : i32, i32
  }
  func.func @transform_6(%arg0: i32) -> (i32, i32) {
    %c0_i32 = arith.constant 0 : i32
    %c0_i32_0 = arith.constant 0 : i32
    %c0_i32_1 = arith.constant 0 : i32
    return %c0_i32, %c0_i32_0 : i32, i32
  }
  func.func @transform_7(%arg0: i32) -> (i32, i32, i32) {
    %c0_i32 = arith.constant 0 : i32
    %c0_i32_0 = arith.constant 0 : i32
    %c0_i32_1 = arith.constant 0 : i32
    return %arg0, %c0_i32, %c0_i32_0 : i32, i32, i32
  }
}

module attributes {stable_mosaic.version = 11 : i64} {
  func.func @_head_kernel(%arg0: i32, %arg1: memref<2x32xf32, #tpu.memory_space<vmem>>, %arg2: memref<1x32xf32, #tpu.memory_space<vmem>>, %arg3: memref<1x32xf32, #tpu.memory_space<vmem>>, %arg4: memref<32x8xf32, #tpu.memory_space<vmem>>, %arg5: memref<1x8xf32, #tpu.memory_space<vmem>>, %arg6: memref<2x8xf32, #tpu.memory_space<vmem>>) attributes {dimension_semantics = [#tpu.dimension_semantics<arbitrary>], iteration_bounds = array<i64: 1>, scalar_prefetch = 0 : i64, scratch_operands = 0 : i64, tpu.core_type = #tpu.core_type<tc>, window_params = [{pipeline_mode = #tpu.pipeline_mode<synchronous>, transform_indices = @transform_0, window_bounds = array<i64: 2, 32>}, {pipeline_mode = #tpu.pipeline_mode<synchronous>, transform_indices = @transform_1, window_bounds = array<i64: 1, 32>}, {pipeline_mode = #tpu.pipeline_mode<synchronous>, transform_indices = @transform_2, window_bounds = array<i64: 1, 32>}, {pipeline_mode = #tpu.pipeline_mode<synchronous>, transform_indices = @transform_3, window_bounds = array<i64: 32, 8>}, {pipeline_mode = #tpu.pipeline_mode<synchronous>, transform_indices = @transform_4, window_bounds = array<i64: 1, 8>}, {pipeline_mode = #tpu.pipeline_mode<synchronous>, transform_indices = @transform_5, window_bounds = array<i64: 2, 8>}]} {
    %c0 = arith.constant 0 : index
    %c0_0 = arith.constant 0 : index
    %0 = vector.load %arg1[%c0, %c0_0] : memref<2x32xf32, #tpu.memory_space<vmem>>, vector<2x32xf32>
    %c0_1 = arith.constant 0 : index
    %c0_2 = arith.constant 0 : index
    %1 = vector.load %arg2[%c0_1, %c0_2] : memref<1x32xf32, #tpu.memory_space<vmem>>, vector<1x32xf32>
    %c0_3 = arith.constant 0 : index
    %c0_4 = arith.constant 0 : index
    %2 = vector.load %arg3[%c0_3, %c0_4] : memref<1x32xf32, #tpu.memory_space<vmem>>, vector<1x32xf32>
    %cst = arith.constant dense<0.000000e+00> : vector<2xf32>
    %3 = vector.multi_reduction <add>, %0, %cst [1] : vector<2x32xf32> to vector<2xf32>
    %4 = vector.shape_cast %3 : vector<2xf32> to vector<2x1xf32>
    %cst_5 = arith.constant 3.200000e+01 : f32
    %5 = vector.broadcast %cst_5 : f32 to vector<2x1xf32>
    %6 = arith.divf %4, %5 : vector<2x1xf32>
    %7 = vector.broadcast %6 : vector<2x1xf32> to vector<2x32xf32>
    %8 = arith.subf %0, %7 : vector<2x32xf32>
    %9 = arith.mulf %8, %8 : vector<2x32xf32>
    %cst_6 = arith.constant dense<0.000000e+00> : vector<2xf32>
    %10 = vector.multi_reduction <add>, %9, %cst_6 [1] : vector<2x32xf32> to vector<2xf32>
    %11 = vector.shape_cast %10 : vector<2xf32> to vector<2x1xf32>
    %cst_7 = arith.constant 3.200000e+01 : f32
    %12 = vector.broadcast %cst_7 : f32 to vector<2x1xf32>
    %13 = arith.divf %11, %12 : vector<2x1xf32>
    %cst_8 = arith.constant 9.99999974E-6 : f32
    %14 = vector.broadcast %cst_8 : f32 to vector<2x1xf32>
    %15 = arith.addf %13, %14 : vector<2x1xf32>
    %16 = math.rsqrt %15 : vector<2x1xf32>
    %17 = vector.broadcast %6 : vector<2x1xf32> to vector<2x32xf32>
    %18 = arith.subf %0, %17 : vector<2x32xf32>
    %19 = vector.broadcast %16 : vector<2x1xf32> to vector<2x32xf32>
    %20 = arith.mulf %18, %19 : vector<2x32xf32>
    %21 = vector.broadcast %1 : vector<1x32xf32> to vector<2x32xf32>
    %22 = arith.mulf %20, %21 : vector<2x32xf32>
    %23 = vector.broadcast %2 : vector<1x32xf32> to vector<2x32xf32>
    %24 = arith.addf %22, %23 : vector<2x32xf32>
    %c0_9 = arith.constant 0 : index
    %c0_10 = arith.constant 0 : index
    %25 = vector.load %arg4[%c0_9, %c0_10] : memref<32x8xf32, #tpu.memory_space<vmem>>, vector<32x8xf32>
    %cst_11 = arith.constant dense<0.000000e+00> : vector<2x8xf32>
    %26 = tpu.matmul %24, %25, %cst_11 {dimension_numbers = #tpu.dot_dimension_numbers<[1], [0], [0], [1], [0, 0, 1, 1], [], []>} : vector<2x32xf32>, vector<32x8xf32>, vector<2x8xf32> -> vector<2x8xf32>
    %c0_12 = arith.constant 0 : index
    %c0_13 = arith.constant 0 : index
    %27 = vector.load %arg5[%c0_12, %c0_13] : memref<1x8xf32, #tpu.memory_space<vmem>>, vector<1x8xf32>
    %28 = vector.broadcast %27 : vector<1x8xf32> to vector<2x8xf32>
    %29 = arith.addf %26, %28 : vector<2x8xf32>
    %c0_14 = arith.constant 0 : index
    %c0_15 = arith.constant 0 : index
    %30 = vector.load %arg6[%c0_14, %c0_15] : memref<2x8xf32, #tpu.memory_space<vmem>>, vector<2x8xf32>
    tpu.vector_store %arg6[%c0_14, %c0_15], %29 {strides = array<i32>} : memref<2x8xf32, #tpu.memory_space<vmem>>, vector<2x8xf32>,
    return
  }
  func.func @transform_0(%arg0: i32) -> (i32, i32) {
    %c0_i32 = arith.constant 0 : i32
    %c0_i32_0 = arith.constant 0 : i32
    %c0_i32_1 = arith.constant 0 : i32
    return %c0_i32, %c0_i32_0 : i32, i32
  }
  func.func @transform_1(%arg0: i32) -> (i32, i32) {
    %c0_i32 = arith.constant 0 : i32
    %c0_i32_0 = arith.constant 0 : i32
    %c0_i32_1 = arith.constant 0 : i32
    return %c0_i32, %c0_i32_0 : i32, i32
  }
  func.func @transform_2(%arg0: i32) -> (i32, i32) {
    %c0_i32 = arith.constant 0 : i32
    %c0_i32_0 = arith.constant 0 : i32
    %c0_i32_1 = arith.constant 0 : i32
    return %c0_i32, %c0_i32_0 : i32, i32
  }
  func.func @transform_3(%arg0: i32) -> (i32, i32) {
    %c0_i32 = arith.constant 0 : i32
    %c0_i32_0 = arith.constant 0 : i32
    %c0_i32_1 = arith.constant 0 : i32
    return %c0_i32, %c0_i32_0 : i32, i32
  }
  func.func @transform_4(%arg0: i32) -> (i32, i32) {
    %c0_i32 = arith.constant 0 : i32
    %c0_i32_0 = arith.constant 0 : i32
    %c0_i32_1 = arith.constant 0 : i32
    return %c0_i32, %c0_i32_0 : i32, i32
  }
  func.func @transform_5(%arg0: i32) -> (i32, i32) {
    %c0_i32 = arith.constant 0 : i32
    %c0_i32_0 = arith.constant 0 : i32
    %c0_i32_1 = arith.constant 0 : i32
    return %c0_i32, %c0_i32_0 : i32, i32
  }
}

</mosaic_0001>

<bundles_post_ra>
// kernel: vit_forward.6
= control target key start
LH: loop header
LB: loop body
LE: loop exit
PB: predicated region body
PF: predicated region fallthrough
CT: control target
= control target key end

     0   :  { %s449_s15 = smov 0   ;;  %s493_s0 = inlined_call_operand.vmem [shape: f32[2,16,48], index: 0, kind: input, shape index: {}]   ;;  %s494_s1 = inlined_call_operand.vmem [shape: f32[48,32], index: 1, kind: input, shape index: {}]   ;;  %s495_s2 = inlined_call_operand.vmem [shape: f32[1,32], index: 2, kind: input, shape index: {}]   ;;  %s496_s3 = inlined_call_operand.vmem [shape: f32[1,16,32], index: 3, kind: input, shape index: {}]   ;;  %s497_s4 = inlined_call_operand.vmem [shape: f32[2,16,32], index: 4, kind: output, shape index: {}]  }
   0x1 LB: > { %s357_s16 = sadd.s32 4294967295, %s422_s15   ;;  %p361_p0 = scmp.ge.s32.totalorder %s422_s15, 1  ;;  %s422_s15 = sphi %s449_s15, %s14_s15  }
   0x2   : > { %p162_p1 = scmp.lt.s32.totalorder %s422_s15, 3 }
   0x4   : > { %p163_p2 = pnand %p361_p0, %p162_p1 }
   0x5   : > { %v200_v0 = vld [vmem:[%s494_s1] sm:$0xff] (!%p163_p2)  ;;  %v201_v1 = vld [vmem:[%s494_s1 + $0x8] sm:$0xff] (!%p163_p2)  ;;  %v202_v2 = vld [vmem:[%s494_s1 + $0x10] sm:$0xff] (!%p163_p2)  ;;  %p188_p3 = scmp.lt.s32.totalorder (!%p163_p2), %s357_s16, 1  ;;  %vm213_vm0 = vcmask (!%p163_p2), 392192   ;;  %vm299_vm1 = vcmask (!%p163_p2), 261120  }
   0x6   : > { %166 = sbr.rel (%p163_p2) target bundleno = 238 (0xee), region = 36  ;;  %v396_v3 = vpack.c.bf16 (!%p163_p2), %v201_v1, %v200_v0  ;;  %v203_v4 = vld [vmem:[%s494_s1 + $0x18] sm:$0xff] (!%p163_p2)  ;;  %v204_v6 = vld [vmem:[%s494_s1 + $0x20] sm:$0xff] (!%p163_p2)  ;;  %v205_v7 = vld [vmem:[%s494_s1 + $0x28] sm:$0xff] (!%p163_p2) }
   0x7   : > { %v400_v5 = vpack.c.bf16 (!%p163_p2), %v203_v4, %v202_v2  ;;  %v404_v8 = vpack.c.bf16 (!%p163_p2), %v205_v7, %v204_v6  ;;  %v366_v11 = vld [vmem:[%s495_s2] ss:$0 sm:$0xff] (!%p163_p2)  ;;  %v296_v13 = vld [vmem:[%s496_s3 + $0x8] sm:$0xff] (!%p163_p2) }
   0x8   : > { %397 = vmatprep.subr.bf16.mxu0 (!%p163_p2), %v396_v3  ;;  %v295_v16 = vld [vmem:[%s496_s3] sm:$0xff] (!%p163_p2) }
   0x9   : > { %399 = vmatpush3.bf16.msra.mxu0 (!%p163_p2), %v396_v3 }
   0xa   : > { %401 = vmatprep.subr.bf16.mxu0 (!%p163_p2), %v400_v5 }
   0xd   : > { %s499_s16 = smov (!%p188_p3, %s357_s16), 1  ;;  %403 = vmatpush3.bf16.msra.mxu0 %v400_v5 }
   0xe   : > { %s371_s29 = sshll.u32 %s499_s16, 4  ;;  %405 = vmatprep.subr.bf16.mxu0 %v404_v8 }
   0xf   : > { %s192_s6 = scalar_lea.vmem %s493_s0, %s371_s29  ;;  %s197_s16 = scalar_lea.vmem %s497_s4, %s371_s29 }
  0x10   : > { %v198_v9 = vld [vmem:[%s192_s6] sm:$0xff]  ;;  %v199_v10 = vld [vmem:[%s192_s6 + $0x8] sm:$0xff] }
  0x11   : > { %393 = vmatprep.mubr.msk.f32.mxu0 %vm213_vm0, %v198_v9  ;;  %407 = vmatpush3.bf16.msra.mxu0 %v404_v8 }
  0x14   : > { %394 = vmatmul.mubr.msk.f32.vlgmr.msra.gmra.mrb[0].mxu0 %vm213_vm0, %v199_v10 }
  0xe7   : > { %v395_v12 = vpop.f32.mrb[0].mxu0 }
  0xe8   : > { %v292_v14 = vadd.f32 %v395_v12, %v366_v11  ;;  %v286_v15 = vpop.f32.mrb[1].mxu0 }
  0xe9   : > { %v287_v17 = vadd.f32 %v366_v11, %v286_v15 }
  0xea   : > { %v298_v18 = vadd.f32 %v296_v13, %v292_v14 }
  0xeb   : > { %v297_v19 = vadd.f32 %v295_v16, %v287_v17 }
  0xec   : > { %301 = vst.msk [vmem:[%s197_s16 + $0x8] sm:$0xff] %vm299_vm1, %v298_v18 }
  0xed   : > { %300 = vst.msk [vmem:[%s197_s16] sm:$0xff] %vm299_vm1, %v297_v19 }
  0xee PF: > { %s14_s15 = sadd.s32 1, %s422_s15  }
  0xef   : > { %p11_p4 = scmp.ge.s32.totalorder %s14_s15, 4  }
  0xf1   :  { %13 = sbr.rel (!%p11_p4) target bundleno = 1 (0x1), region = 66 }

// kernel: vit_forward.11
= control target key start
LH: loop header
LB: loop body
LE: loop exit
PB: predicated region body
PF: predicated region fallthrough
CT: control target
= control target key end

     0   :  { %vm24_vm0 = vcmask 254976   ;;  %s280_s0 = inlined_call_operand.vmem [shape: f32[2,32], index: 0, kind: input, shape index: {}]   ;;  %s281_s1 = inlined_call_operand.vmem [shape: f32[1,32], index: 1, kind: input, shape index: {}]   ;;  %s282_s2 = inlined_call_operand.vmem [shape: f32[1,32], index: 2, kind: input, shape index: {}]   ;;  %s283_s3 = inlined_call_operand.vmem [shape: f32[32,8], index: 3, kind: input, shape index: {}]   ;;  %s284_s4 = inlined_call_operand.vmem [shape: f32[1,8], index: 4, kind: input, shape index: {}]   ;;  %s285_s5 = inlined_call_operand.hbm [shape: f32[2,8], index: 5, kind: output, shape index: {}]  }
   0x1   :  { %v21_v0 = vld [vmem:[%s280_s0] sm:$0x3] }
   0x2   :  { %10 = vsyncpa [#allocation3], 0  ;;  %v25_v1 = vsel %vm24_vm0, %v21_v0, 0.0  ;;  %v53_v7 = vld [vmem:[%s283_s3] sm:$0xff]  ;;  %v54_v8 = vld [vmem:[%s283_s3 + $0x8] sm:$0xff]  ;;  %v210_v10 = vmov 0.0|0.0  }
   0x3   :  { %26 = vadd.xlane.f32.xlu0 %v25_v1  ;;  %v55_v9 = vld [vmem:[%s283_s3 + $0x10] sm:$0xff]  ;;  %174 = vmatprep.subr.bf16.mxu0 %v210_v10  ;;  %v175_v11 = vpack.c.bf16 %v54_v8, %v53_v7  ;;  %v56_v12 = vld [vmem:[%s283_s3 + $0x18] sm:$0xff]  ;;  %vm211_vm1 = vmmov 0   ;;  %v212_v13 = vmov 0.0   ;;  %v154_v19 = vld [vmem:[%s281_s1] ss:$0 sm:$0xff] }
   0x4   :  { %171 = vmatprep.mubr.msk.f32.mxu0 %vm211_vm1, %v212_v13  ;;  %v178_v14 = vpack.c.bf16 %v56_v12, %v55_v9  ;;  %v155_v21 = vld [vmem:[%s282_s2] ss:$0 sm:$0xff]  ;;  %vm64_vm2 = vcmask 261120   ;;  %s213_s7 = smov [#allocation2]   ;;  %vm138_vm3 = vcmask 58368  }
   0x5   :  { %176 = vmatpush3.bf16.msra.mxu0 %v175_v11  ;;  %v156_v24 = vld [vmem:[%s284_s4] ss:$0 sm:$0xff]  ;;  %s146_s8 = sshll.u32 %s213_s7, 4  ;;  %s147_s8 = int_to_ptr.vmem [resolvable:$true] %s146_s8 }
   0x6   :  { %177 = vmatprep.subr.bf16.mxu0 %v210_v10  ;;  %s186_s1 = scalar_lea.vmem %s147_s8, 32  ;;  %p191_p1 = scmp.lt.s32.totalorder %s147_s8, %s147_s8 }
   0x7   :  { %p187_p0 = scmp.ne.s32.totalorder %s147_s8, %s186_s1  ;;  %p192_p2 = scmp.lt.s32.totalorder %s186_s1, %s186_s1 }
   0x9   :  { %179 = vmatpush3.bf16.msra.mxu0 %v178_v14  ;;  %p193_p3 = por %p192_p2, %p191_p1 }
   0xb   :  { %p194_p4 = pnand %p193_p3, %p187_p0 }
  0x90   :  { %v27_v2 = vpop.xlane.xlu0 %26 }
  0x91   :  { %v29_v3 = vmul.f32 0.03125, %v27_v2 }
  0x93   :  { %v30_v4 = vsub.f32 %v21_v0, %v29_v3 }
  0x95   :  { %v31_v5 = vmul.f32 %v30_v4, %v30_v4 }
  0x97   :  { %v32_v6 = vsel %vm24_vm0, %v31_v5, 0.0 }
  0x98   :  { %33 = vadd.xlane.f32.xlu0 %v32_v6 }
 0x125   :  { %v34_v15 = vpop.xlane.xlu0 %33 }
 0x126   :  { %v35_v16 = vmul.f32 0.03125, %v34_v15 }
 0x128   :  { %v36_v17 = vadd.f32 1e-05, %v35_v16 }
 0x12a   :  { %184 = vrsqrt.f32 %v36_v17 }
 0x134   :  { %v185_v18 = vpop.eup %184 }
 0x135   :  { %v38_v20 = vmul.f32 %v185_v18, %v30_v4 }
 0x137   :  { %v45_v22 = vmul.f32 %v154_v19, %v38_v20 }
 0x139   :  { %v52_v23 = vadd.f32 %v155_v21, %v45_v22 }
 0x13b   :  { %172 = vmatmul.mubr.msk.f32.vlgmr.msra.gmra.mrb[0].mxu0 %vm64_vm2, %v52_v23 }
 0x20e   :  { %v134_v25 = vpop.f32.mrb[0].mxu0 }
 0x20f   :  { %v135_v26 = vadd.f32 %v156_v24, %v134_v25  ;;  %v173_v27 = vpop.f32.mrb[1].mxu0 }
 0x211   :  { %139 = vst.msk [vmem:[#allocation2] sm:$0x3] %vm138_vm3, %v135_v26 }
 0x212   :  { %197 = shalt.err (!%p194_p4)
}
 0x213   :  { %s198_s10 = scalar_lea.hbm %s285_s5, 32 }
 0x214   :  { %p199_p5 = scmp.ne.s32.totalorder %s285_s5, %s198_s10  ;;  %p202_p6 = scmp.lt.u32.totalorder %s198_s10, %s285_s5 }
 0x216   :  { %p204_p7 = pnand %p202_p6, %p199_p5 }
 0x218   :  { %207 = shalt.err (!%p204_p7)
}
 0x219   :  { %149 = dma.vmem_to_hbm [thread:$0]  %s147_s8, 32, %s285_s5, [#allocation3]  }
 0x21a   :  { %208 = dma.done.wait [#allocation3], 32  }
 0x21b   :  { %209 = vsyncadd [#allocation3], 4294967264 }
 0x21c   :  { %153 = vsyncpa [#allocation3], 1 }

// kernel: vit_forward.8
= control target key start
LH: loop header
LB: loop body
LE: loop exit
PB: predicated region body
PF: predicated region fallthrough
CT: control target
= control target key end

     0   :  { %s797_s24 = smov 0   ;;  %s908_s0 = inlined_call_operand.vmem [shape: f32[2,17,32], index: 0, kind: input, shape index: {}]   ;;  %s909_s1 = inlined_call_operand.vmem [shape: f32[1,32], index: 1, kind: input, shape index: {}]   ;;  %s910_s2 = inlined_call_operand.vmem [shape: f32[1,32], index: 2, kind: input, shape index: {}]   ;;  %s911_s3 = inlined_call_operand.vmem [shape: f32[32,64], index: 3, kind: input, shape index: {}]   ;;  %s912_s4 = inlined_call_operand.vmem [shape: f32[1,64], index: 4, kind: input, shape index: {}]   ;;  %s913_s5 = inlined_call_operand.vmem [shape: f32[64,32], index: 5, kind: input, shape index: {}]   ;;  %s914_s6 = inlined_call_operand.vmem [shape: f32[1,32], index: 6, kind: input, shape index: {}]   ;;  %s915_s7 = inlined_call_operand.vmem [shape: f32[2,17,32], index: 7, kind: output, shape index: {}]  }
   0x1 LB: > { %s625_s25 = sadd.s32 4294967295, %s752_s24   ;;  %p629_p0 = scmp.ge.s32.totalorder %s752_s24, 1  ;;  %s752_s24 = sphi %s797_s24, %s17_s24  }
   0x2   : > { %p237_p1 = scmp.lt.s32.totalorder %s752_s24, 3 }
   0x4   : > { %p238_p2 = pnand %p629_p0, %p237_p1 }
   0x5   : > { %p269_p3 = scmp.lt.s32.totalorder (!%p238_p2), %s625_s25, 1  ;;  %vm284_vm0 = vcmask (!%p238_p2), 261120   ;;  %vm291_vm1 = vcmask (!%p238_p2), 253952   ;;  %v344_v21 = vld [vmem:[%s911_s3] sm:$0xff] (!%p238_p2)  ;;  %v345_v22 = vld [vmem:[%s911_s3 + $0x8] sm:$0xff] (!%p238_p2)  ;;  %v346_v23 = vld [vmem:[%s911_s3 + $0x10] sm:$0xff] (!%p238_p2) }
   0x6   : > { %241 = sbr.rel (%p238_p2) target bundleno = 788 (0x314), region = 48  ;;  %v754_v24 = vmov (!%p238_p2), 0.0|0.0   ;;  %v705_v25 = vpack.c.bf16 (!%p238_p2), %v345_v22, %v344_v21  ;;  %v347_v26 = vld [vmem:[%s911_s3 + $0x18] sm:$0xff] (!%p238_p2)  ;;  %vm755_vm2 = vmmov (!%p238_p2), 0   ;;  %v756_v27 = vmov (!%p238_p2), 0.0   ;;  %v459_v52 = vld [vmem:[%s913_s5] sm:$0xff] (!%p238_p2) }
   0x7   : > { %704 = vmatprep.subr.bf16.mxu0 (!%p238_p2), %v754_v24  ;;  %670 = vmatprep.mubr.msk.f32.mxu0 (!%p238_p2), %vm755_vm2, %v756_v27  ;;  %v708_v28 = vpack.c.bf16 (!%p238_p2), %v347_v26, %v346_v23  ;;  %v632_v39 = vld [vmem:[%s909_s1] ss:$0 sm:$0xff] (!%p238_p2)  ;;  %v460_v53 = vld [vmem:[%s913_s5 + $0x8] sm:$0xff] (!%p238_p2)  ;;  %v461_v55 = vld [vmem:[%s913_s5 + $0x10] sm:$0xff] (!%p238_p2)  ;;  %vm474_vm3 = vcmask (!%p238_p2), 523264  }
   0x8   : > { %710 = vmatprep.subr.bf16.mxu1 (!%p238_p2), %v754_v24  ;;  %695 = vmatprep.mubr.msk.f32.mxu1 (!%p238_p2), %vm755_vm2, %v756_v27  ;;  %v633_v41 = vld [vmem:[%s910_s2] ss:$0 sm:$0xff] (!%p238_p2)  ;;  %v711_v54 = vpack.c.bf16 (!%p238_p2), %v460_v53, %v459_v52  ;;  %v462_v56 = vld [vmem:[%s913_s5 + $0x18] sm:$0xff] (!%p238_p2)  ;;  %v464_v59 = vld [vmem:[%s913_s5 + $0x28] sm:$0xff] (!%p238_p2) }
   0x9   : > { %706 = vmatpush3.bf16.msra.mxu0 (!%p238_p2), %v705_v25  ;;  %v714_v57 = vpack.c.bf16 (!%p238_p2), %v462_v56, %v461_v55  ;;  %v463_v58 = vld [vmem:[%s913_s5 + $0x20] sm:$0xff] (!%p238_p2)  ;;  %v465_v61 = vld [vmem:[%s913_s5 + $0x30] sm:$0xff] (!%p238_p2)  ;;  %v466_v62 = vld [vmem:[%s913_s5 + $0x38] sm:$0xff] (!%p238_p2) }
   0xa   : > { %707 = vmatprep.subr.bf16.mxu0 (!%p238_p2), %v754_v24  ;;  %712 = vmatpush3.bf16.msra.mxu1 (!%p238_p2), %v711_v54  ;;  %v717_v60 = vpack.c.bf16 (!%p238_p2), %v464_v59, %v463_v58  ;;  %v720_v63 = vpack.c.bf16 (!%p238_p2), %v466_v62, %v465_v61 }
   0xb   : > { %713 = vmatprep.subr.bf16.mxu1 (!%p238_p2), %v754_v24 }
   0xd   : > { %s917_s25 = smov (!%p269_p3, %s625_s25), 1  ;;  %709 = vmatpush3.bf16.msra.mxu0 %v708_v28 }
   0xe   : > { %s722_s26 = smul.u32 24, %s917_s25  ;;  %715 = vmatpush3.bf16.msra.mxu1 %v714_v57 }
   0xf   : > { %716 = vmatprep.subr.bf16.mxu1 %v754_v24 }
  0x10   : > { %s273_s29 = scalar_lea.vmem %s908_s0, %s722_s26  ;;  %s278_s21 = scalar_lea.vmem %s915_s7, %s722_s26 }
  0x11   : > { %v813_v0 = vld [vmem:[%s273_s29] sm:$0xff]  ;;  %v815_v1 = vld [vmem:[%s273_s29 + $0x10] sm:$0x1]  ;;  %v817_v2 = vld [vmem:[%s273_s29 + $0x8] sm:$0xff] }
  0x12   : > { %v285_v3 = vsel %vm284_vm0, %v813_v0, 0.0  ;;  %v292_v4 = vsel %vm291_vm1, %v815_v1, 0.0  ;;  %v288_v5 = vsel %vm284_vm0, %v817_v2, 0.0  ;;  %718 = vmatpush3.bf16.msra.mxu1 %v717_v60 }
  0x13   : > { %286 = vadd.xlane.f32.xlu0 %v285_v3  ;;  %293 = vadd.xlane.f32.xlu1 %v292_v4  ;;  %v634_v3 = vld [vmem:[%s912_s4] ss:$0 sm:$0xff] }
  0x14   : > { %719 = vmatprep.subr.bf16.mxu1 %v754_v24 }
  0x16   : > { %721 = vmatpush3.bf16.msra.mxu1 %v720_v63 }
  0x17   : > { %289 = vadd.xlane.f32.xlu0 %v288_v5 }
  0xa0   : > { %v287_v6 = vpop.xlane.xlu0 %286  ;;  %v294_v7 = vpop.xlane.xlu1 %293 }
  0xa1   : > { %v296_v8 = vmul.f32 0.03125, %v287_v6  ;;  %v298_v9 = vmul.f32 0.03125, %v294_v7 }
  0xa3   : > { %v299_v10 = vsub.f32 %v813_v0, %v296_v8  ;;  %v301_v11 = vsub.f32 %v815_v1, %v298_v9 }
  0xa4   : > { %v290_v12 = vpop.xlane.xlu0 %289 }
  0xa5   : > { %v297_v13 = vmul.f32 0.03125, %v290_v12  ;;  %v302_v14 = vmul.f32 %v299_v10, %v299_v10  ;;  %v304_v15 = vmul.f32 %v301_v11, %v301_v11 }
  0xa7   : > { %v300_v16 = vsub.f32 %v817_v2, %v297_v13  ;;  %v305_v17 = vsel %vm284_vm0, %v302_v14, 0.0  ;;  %v311_v18 = vsel %vm291_vm1, %v304_v15, 0.0 }
  0xa8   : > { %306 = vadd.xlane.f32.xlu1 %v305_v17 }
  0xa9   : > { %v303_v19 = vmul.f32 %v300_v16, %v300_v16 }
  0xab   : > { %v308_v20 = vsel %vm284_vm0, %v303_v19, 0.0 }
  0xac   : > { %312 = vadd.xlane.f32.xlu1 %v311_v18  ;;  %309 = vadd.xlane.f32.xlu0 %v308_v20 }
 0x135   : > { %v307_v29 = vpop.xlane.xlu1 %306 }
 0x136   : > { %v314_v30 = vmul.f32 0.03125, %v307_v29  ;;  %v638_v29 = vld [vmem:[%s914_s6] ss:$0 sm:$0xff] }
 0x138   : > { %v317_v31 = vadd.f32 1e-05, %v314_v30 }
 0x139   : > { %v313_v32 = vpop.xlane.xlu1 %312  ;;  %v310_v33 = vpop.xlane.xlu0 %309 }
 0x13a   : > { %734 = vrsqrt.f32 %v317_v31  ;;  %v316_v34 = vmul.f32 0.03125, %v313_v32  ;;  %v315_v35 = vmul.f32 0.03125, %v310_v33 }
 0x13c   : > { %v319_v36 = vadd.f32 1e-05, %v316_v34  ;;  %v318_v37 = vadd.f32 1e-05, %v315_v35 }
 0x13e   : > { %736 = vrsqrt.f32 %v319_v36 }
 0x13f   : > { %738 = vrsqrt.f32 %v318_v37 }
 0x144   : > { %v735_v38 = vpop.eup %734 }
 0x145   : > { %v323_v40 = vmul.f32 %v735_v38, %v299_v10 }
 0x147   : > { %v332_v42 = vmul.f32 %v632_v39, %v323_v40 }
 0x148   : > { %v737_v43 = vpop.eup %736 }
 0x149   : > { %v739_v44 = vpop.eup %738  ;;  %v341_v45 = vadd.f32 %v633_v41, %v332_v42  ;;  %v325_v47 = vmul.f32 %v737_v43, %v301_v11 }
 0x14a   : > { %v324_v46 = vmul.f32 %v739_v44, %v300_v16 }
 0x14b   : > { %671 = vmatmul.mubr.msk.f32.vlgmr.msra.gmra.mrb[0].mxu0 %vm284_vm0, %v341_v45  ;;  %v334_v50 = vmul.f32 %v632_v39, %v325_v47 }
 0x14c   : > { %673 = vmatprep.mubr.msk.f32.mxu0 %vm755_vm2, %v756_v27  ;;  %v333_v48 = vmul.f32 %v632_v39, %v324_v46 }
 0x14d   : > { %v343_v51 = vadd.f32 %v633_v41, %v334_v50 }
 0x14e   : > { %v342_v49 = vadd.f32 %v633_v41, %v333_v48 }
 0x150   : > { %674 = vmatmul.mubr.msk.f32.gmra.mrb[2].mxu0 %vm284_vm0, %v342_v49 }
 0x151   : > { %676 = vmatprep.mubr.msk.f32.mxu0 %vm755_vm2, %v756_v27 }
 0x154   : > { %677 = vmatmul.mubr.msk.f32.gmra.mrb[4].mxu0 %vm284_vm0, %v343_v51 }
 0x21e   : > { %v430_v4 = vpop.f32.mrb[0].mxu0 }
 0x21f   : > { %v431_v5 = vadd.f32 %v634_v3, %v430_v4  ;;  %v672_v6 = vpop.f32.mrb[1].mxu0 }
 0x221   : > { %v447_v7 = vmul.f32 0.70710677, %v431_v5  ;;  %v444_v17 = vmul.f32 0.5, %v431_v5 }
 0x223   : > { %740 = verf.f32 %v447_v7  ;;  %v435_v8 = vpop.f32.mrb[2].mxu0 }
 0x224   : > { %v436_v9 = vadd.f32 %v634_v3, %v435_v8  ;;  %v675_v10 = vpop.f32.mrb[3].mxu0 }
 0x226   : > { %v448_v11 = vmul.f32 0.70710677, %v436_v9  ;;  %v445_v21 = vmul.f32 0.5, %v436_v9 }
 0x227   : > { %v440_v12 = vpop.f32.mrb[4].mxu0 }
 0x228   : > { %742 = verf.f32 %v448_v11  ;;  %v441_v13 = vadd.f32 %v634_v3, %v440_v12  ;;  %v678_v14 = vpop.f32.mrb[5].mxu0 }
 0x22a   : > { %v449_v15 = vmul.f32 0.70710677, %v441_v13  ;;  %v446_v25 = vmul.f32 0.5, %v441_v13 }
 0x22c   : > { %744 = verf.f32 %v449_v15 }
 0x22d   : > { %v741_v16 = vpop.eup %740 }
 0x22e   : > { %v453_v18 = vadd.f32 1.0, %v741_v16 }
 0x230   : > { %v456_v19 = vmul.f32 %v453_v18, %v444_v17 }
 0x232   : > { %v743_v20 = vpop.eup %742  ;;  %696 = vmatmul.mubr.msk.f32.vlgmr.msra.gmra.mrb[0].mxu1 %vm474_vm3, %v456_v19 }
 0x233   : > { %v454_v22 = vadd.f32 1.0, %v743_v20  ;;  %698 = vmatprep.mubr.msk.f32.mxu1 %vm755_vm2, %v756_v27 }
 0x235   : > { %v457_v23 = vmul.f32 %v454_v22, %v445_v21 }
 0x236   : > { %v745_v24 = vpop.eup %744 }
 0x237   : > { %v455_v26 = vadd.f32 1.0, %v745_v24  ;;  %699 = vmatmul.mubr.msk.f32.gmra.mrb[2].mxu1 %vm474_vm3, %v457_v23 }
 0x238   : > { %701 = vmatprep.mubr.msk.f32.mxu1 %vm755_vm2, %v756_v27 }
 0x239   : > { %v458_v28 = vmul.f32 %v455_v26, %v446_v25 }
 0x23b   : > { %702 = vmatmul.mubr.msk.f32.gmra.mrb[4].mxu1 %vm474_vm3, %v458_v28 }
 0x305   : > { %v550_v30 = vpop.f32.mrb[0].mxu1 }
 0x306   : > { %v551_v31 = vadd.f32 %v638_v29, %v550_v30  ;;  %v697_v32 = vpop.f32.mrb[1].mxu1 }
 0x308   : > { %v564_v33 = vadd.f32 %v551_v31, %v813_v0 }
 0x30a   : > { %567 = vst.msk [vmem:[%s278_s21] sm:$0xff] %vm284_vm0, %v564_v33  ;;  %v555_v34 = vpop.f32.mrb[2].mxu1 }
 0x30b   : > { %v556_v27 = vadd.f32 %v638_v29, %v555_v34  ;;  %v700_v35 = vpop.f32.mrb[3].mxu1 }
 0x30d   : > { %v565_v36 = vadd.f32 %v556_v27, %v817_v2 }
 0x30e   : > { %v560_v37 = vpop.f32.mrb[4].mxu1 }
 0x30f   : > { %568 = vst.msk [vmem:[%s278_s21 + $0x8] sm:$0xff] %vm284_vm0, %v565_v36  ;;  %v561_v38 = vadd.f32 %v638_v29, %v560_v37  ;;  %v703_v39 = vpop.f32.mrb[5].mxu1 }
 0x311   : > { %v566_v40 = vadd.f32 %v561_v38, %v815_v1 }
 0x313   : > { %569 = vst.msk [vmem:[%s278_s21 + $0x10] sm:$0x1] %vm291_vm1, %v566_v40 }
 0x314 PF: > { %s17_s24 = sadd.s32 1, %s752_s24  }
 0x315   : > { %p14_p4 = scmp.ge.s32.totalorder %s17_s24, 4  }
 0x317   :  { %16 = sbr.rel (!%p14_p4) target bundleno = 1 (0x1), region = 78 }

// kernel: vit_forward.7
= control target key start
LH: loop header
LB: loop body
LE: loop exit
PB: predicated region body
PF: predicated region fallthrough
CT: control target
= control target key end

     0   :  { %s2106_s24 = smov 0   ;;  %s2443_s0 = inlined_call_operand.vmem [shape: f32[2,17,32], index: 0, kind: input, shape index: {}]   ;;  %s2444_s1 = inlined_call_operand.vmem [shape: f32[1,32], index: 1, kind: input, shape index: {}]   ;;  %s2445_s2 = inlined_call_operand.vmem [shape: f32[1,32], index: 2, kind: input, shape index: {}]   ;;  %s2446_s3 = inlined_call_operand.vmem [shape: f32[32,96], index: 3, kind: input, shape index: {}]   ;;  %s2447_s4 = inlined_call_operand.vmem [shape: f32[1,96], index: 4, kind: input, shape index: {}]   ;;  %s2448_s5 = inlined_call_operand.vmem [shape: f32[32,32], index: 5, kind: input, shape index: {}]   ;;  %s2449_s6 = inlined_call_operand.vmem [shape: f32[1,32], index: 6, kind: input, shape index: {}]   ;;  %s2450_s7 = inlined_call_operand.vmem [shape: f32[2,17,32], index: 7, kind: output, shape index: {}]  }
   0x1 LB: > { %s1603_s25 = sadd.s32 4294967295, %s2047_s24   ;;  %p1607_p0 = scmp.ge.s32.totalorder %s2047_s24, 1  ;;  %s2047_s24 = sphi %s2106_s24, %s17_s24  }
   0x2   : > { %p237_p1 = scmp.lt.s32.totalorder %s2047_s24, 3 }
   0x4   : > { %p238_p2 = pnand %p1607_p0, %p237_p1 }
   0x5   : > { %p269_p3 = scmp.lt.s32.totalorder (!%p238_p2), %s1603_s25, 1  ;;  %vm284_vm0 = vcmask (!%p238_p2), 261120   ;;  %vm291_vm1 = vcmask (!%p238_p2), 253952   ;;  %v344_v21 = vld [vmem:[%s2446_s3] sm:$0xff] (!%p238_p2)  ;;  %v345_v22 = vld [vmem:[%s2446_s3 + $0x8] sm:$0xff] (!%p238_p2)  ;;  %v346_v23 = vld [vmem:[%s2446_s3 + $0x10] sm:$0xff] (!%p238_p2) }
   0x6   : > { %241 = sbr.rel (%p238_p2) target bundleno = 1850 (0x73a), region = 48  ;;  %v2049_v24 = vmov (!%p238_p2), 0.0|0.0   ;;  %v1879_v25 = vpack.c.bf16 (!%p238_p2), %v345_v22, %v344_v21  ;;  %v347_v26 = vld [vmem:[%s2446_s3 + $0x18] sm:$0xff] (!%p238_p2)  ;;  %vm2050_vm2 = vmmov (!%p238_p2), 0   ;;  %v2051_v27 = vmov (!%p238_p2), 0.0   ;;  %s2052_s21 = smov (!%p238_p2), 96  }
   0x7   : > { %1878 = vmatprep.subr.bf16.mxu0 (!%p238_p2), %v2049_v24  ;;  %1732 = vmatprep.mubr.msk.f32.mxu0 (!%p238_p2), %vm2050_vm2, %v2051_v27  ;;  %v1882_v28 = vpack.c.bf16 (!%p238_p2), %v347_v26, %v346_v23  ;;  %v1610_v39 = vld [vmem:[%s2444_s1] ss:$0 sm:$0xff] (!%p238_p2)  ;;  %s2053_s22 = smov (!%p238_p2), 80   ;;  %s2054_s23 = smov (!%p238_p2), 88   ;;  %vm456_vm3 = vcmask (!%p238_p2), 64512   ;;  %vm552_vm5 = vcmask (!%p238_p2), 138240  }
   0x8   : > { %1884 = vmatprep.subr.bf16.mxu1 (!%p238_p2), %v2049_v24  ;;  %1747 = vmatprep.mubr.msk.f32.mxu1 (!%p238_p2), %vm2050_vm2, %v2051_v27  ;;  %v1611_v41 = vld [vmem:[%s2445_s2] ss:$0 sm:$0xff] (!%p238_p2)  ;;  %s2055_s27 = smov (!%p238_p2), 120   ;;  %s2056_s28 = smov (!%p238_p2), 112   ;;  %vm2186_vm4 = vmpackc.low (!%p238_p2), %vm456_vm3, %vm456_vm3  ;;  %vm559_vm6 = vcmask (!%p238_p2), 131072   ;;  %vm604_vm7 = vcmask (!%p238_p2), 1040384  }
   0x9   : > { %1880 = vmatpush3.bf16.msra.mxu0 (!%p238_p2), %v1879_v25  ;;  %v1612_v54 = vld [vmem:[%s2447_s4] ss:$0 sm:$0xff] (!%p238_p2)  ;;  %s2057_s30 = smov (!%p238_p2), 72   ;;  %s2058_s8 = smov (!%p238_p2), 104   ;;  %vm1434_vm8 = vcmask (!%p238_p2), 130048   ;;  %vm1438_vm9 = vcmask (!%p238_p2), 195584  }
   0xa   : > { %1881 = vmatprep.subr.bf16.mxu0 (!%p238_p2), %v2049_v24  ;;  %s2059_s9 = smov (!%p238_p2), 64   ;;  %s2060_s10 = smov (!%p238_p2), 56  }
   0xb   : > { %s2061_s11 = smov (!%p238_p2), 48   ;;  %s2062_s12 = smov (!%p238_p2), 40  }
   0xc   : > { %s2063_s13 = smov (!%p238_p2), 8  }
   0xd   : > { %s2454_s25 = smov (!%p269_p3, %s1603_s25), 1  ;;  %1883 = vmatpush3.bf16.msra.mxu0 %v1882_v28 }
   0xe   : > { %s1918_s26 = smul.u32 24, %s2454_s25  ;;  %1888 = vmatprep.subr.bf16.mxu0 %v2049_v24 }
  0x10   : > { %s2122_s29 = scalar_lea.vmem %s2443_s0, %s1918_s26 }
  0x11   : > { %v279_v0 = vld [vmem:[%s2122_s29] sm:$0xff]  ;;  %v281_v1 = vld [vmem:[%s2122_s29 + $0x10] sm:$0x1]  ;;  %v280_v2 = vld [vmem:[%s2122_s29 + $0x8] sm:$0xff] }
  0x12   : > { %v285_v3 = vsel %vm284_vm0, %v279_v0, 0.0  ;;  %v292_v4 = vsel %vm291_vm1, %v281_v1, 0.0  ;;  %v288_v5 = vsel %vm284_vm0, %v280_v2, 0.0 }
  0x13   : > { %286 = vadd.xlane.f32.xlu0 %v285_v3  ;;  %293 = vadd.xlane.f32.xlu1 %v292_v4 }
  0x17   : > { %289 = vadd.xlane.f32.xlu0 %v288_v5 }
  0xa0   : > { %v287_v6 = vpop.xlane.xlu0 %286  ;;  %v294_v7 = vpop.xlane.xlu1 %293 }
  0xa1   : > { %v296_v8 = vmul.f32 0.03125, %v287_v6  ;;  %v298_v9 = vmul.f32 0.03125, %v294_v7 }
  0xa3   : > { %v299_v10 = vsub.f32 %v279_v0, %v296_v8  ;;  %v301_v11 = vsub.f32 %v281_v1, %v298_v9 }
  0xa4   : > { %v290_v12 = vpop.xlane.xlu0 %289 }
  0xa5   : > { %v297_v13 = vmul.f32 0.03125, %v290_v12  ;;  %v302_v14 = vmul.f32 %v299_v10, %v299_v10  ;;  %v304_v15 = vmul.f32 %v301_v11, %v301_v11 }
  0xa7   : > { %v300_v16 = vsub.f32 %v280_v2, %v297_v13  ;;  %v305_v17 = vsel %vm284_vm0, %v302_v14, 0.0  ;;  %v311_v18 = vsel %vm291_vm1, %v304_v15, 0.0 }
  0xa8   : > { %306 = vadd.xlane.f32.xlu1 %v305_v17 }
  0xa9   : > { %v303_v19 = vmul.f32 %v300_v16, %v300_v16 }
  0xab   : > { %v308_v20 = vsel %vm284_vm0, %v303_v19, 0.0 }
  0xac   : > { %312 = vadd.xlane.f32.xlu1 %v311_v18  ;;  %309 = vadd.xlane.f32.xlu0 %v308_v20 }
 0x135   : > { %v307_v29 = vpop.xlane.xlu1 %306 }
 0x136   : > { %v314_v30 = vmul.f32 0.03125, %v307_v29 }
 0x138   : > { %v317_v31 = vadd.f32 1e-05, %v314_v30 }
 0x139   : > { %v313_v32 = vpop.xlane.xlu1 %312  ;;  %v310_v33 = vpop.xlane.xlu0 %309 }
 0x13a   : > { %1984 = vrsqrt.f32 %v317_v31  ;;  %v316_v34 = vmul.f32 0.03125, %v313_v32  ;;  %v315_v35 = vmul.f32 0.03125, %v310_v33 }
 0x13c   : > { %v319_v36 = vadd.f32 1e-05, %v316_v34  ;;  %v318_v37 = vadd.f32 1e-05, %v315_v35 }
 0x13e   : > { %1986 = vrsqrt.f32 %v319_v36 }
 0x13f   : > { %1988 = vrsqrt.f32 %v318_v37 }
 0x144   : > { %v1985_v38 = vpop.eup %1984 }
 0x145   : > { %v323_v40 = vmul.f32 %v1985_v38, %v299_v10 }
 0x147   : > { %v332_v42 = vmul.f32 %v1610_v39, %v323_v40 }
 0x148   : > { %v1987_v43 = vpop.eup %1986 }
 0x149   : > { %v1989_v44 = vpop.eup %1988  ;;  %v341_v45 = vadd.f32 %v1611_v41, %v332_v42  ;;  %v325_v47 = vmul.f32 %v1987_v43, %v301_v11 }
 0x14a   : > { %v324_v46 = vmul.f32 %v1989_v44, %v300_v16 }
 0x14b   : > { %1733 = vmatmul.mubr.msk.f32.vlgmr.msra.gmra.mrb[0].mxu0 %vm284_vm0, %v341_v45  ;;  %v334_v50 = vmul.f32 %v1610_v39, %v325_v47 }
 0x14c   : > { %1735 = vmatprep.mubr.msk.f32.mxu0 %vm2050_vm2, %v2051_v27  ;;  %v333_v48 = vmul.f32 %v1610_v39, %v324_v46 }
 0x14d   : > { %v343_v51 = vadd.f32 %v1611_v41, %v334_v50 }
 0x14e   : > { %v342_v49 = vadd.f32 %v1611_v41, %v333_v48 }
 0x150   : > { %1736 = vmatmul.mubr.msk.f32.gmra.mrb[2].mxu0 %vm284_vm0, %v342_v49 }
 0x151   : > { %1738 = vmatprep.mubr.msk.f32.mxu0 %vm2050_vm2, %v2051_v27 }
 0x154   : > { %1739 = vmatmul.mubr.msk.f32.gmra.mrb[4].mxu0 %vm284_vm0, %v343_v51 }
 0x155   : > { %1762 = vmatprep.mubr.msk.f32.mxu0 %vm2050_vm2, %v2051_v27 }
 0x21e   : > { %v430_v52 = vpop.f32.mrb[0].mxu0 }
 0x21f   : > { %v1734_v53 = vpop.f32.mrb[1].mxu0  ;;  %v431_v56 = vadd.f32 %v1612_v54, %v430_v52 }
 0x221   : > { %v444_v0 = vmul.f32 0.35355338, %v431_v56 }
 0x223   : > { %v435_v55 = vpop.f32.mrb[2].mxu0 }
 0x224   : > { %v436_v57 = vadd.f32 %v1612_v54, %v435_v55  ;;  %v1737_v58 = vpop.f32.mrb[3].mxu0 }
 0x226   : > { %v2171_v59 = vpack.i.bf16 %v436_v57, %v431_v56  ;;  %v445_v63 = vmul.f32 0.35355338, %v436_v57 }
 0x227   : > { %v440_v60 = vpop.f32.mrb[4].mxu0 }
 0x228   : > { %v2173_v61 = vadd.f32 %v1612_v54, %v440_v60  ;;  %1945 = vrot.lane.b32.xlu0 %v2171_v59, %s2052_s21  ;;  %v1740_v62 = vpop.f32.mrb[5].mxu0 }
 0x22a   : > { %454 = vrot.lane.b32.xlu1 %v2173_v61, %s2052_s21  ;;  %v446_v1 = vmul.f32 0.35355338, %v2173_v61 }
 0x22c   : > { %1955 = vrot.lane.b32.xlu0 %v2171_v59, %s2053_s22 }
 0x22e   : > { %1950 = vrot.lane.b32.xlu1 %v2171_v59, %s2054_s23 }
 0x230   : > { %689 = vrot.lane.b32.xlu0 %v445_v63, %s2055_s27 }
 0x232   : > { %697 = vrot.lane.b32.xlu1 %v2173_v61, %s2054_s23  ;;  %s2065_s23 = smov 24  }
 0x234   : > { %933 = vrot.lane.b32.xlu0 %v2173_v61, %s2053_s22  ;;  %s2064_s22 = smov 16  }
 0x236   : > { %687 = vrot.lane.b32.xlu1 %v444_v0, %s2055_s27 }
 0x238   : > { %923 = vrot.lane.b32.xlu0 %v444_v0, %s2056_s28 }
 0x23a   : > { %691 = vrot.lane.b32.xlu1 %v446_v1, %s2055_s27 }
 0x23c   : > { %927 = vrot.lane.b32.xlu0 %v446_v1, %s2056_s28 }
 0x23e   : > { %1960 = vrot.lane.b32.xlu1 %v2171_v59, %s2057_s30 }
 0x240   : > { %1159 = vrot.lane.b32.xlu0 %v444_v0, %s2058_s8 }
 0x242   : > { %925 = vrot.lane.b32.xlu1 %v445_v63, %s2056_s28 }
 0x244   : > { %1163 = vrot.lane.b32.xlu0 %v446_v1, %s2058_s8 }
 0x246   : > { %1169 = vrot.lane.b32.xlu1 %v2173_v61, %s2057_s30 }
 0x24a   : > { %1161 = vrot.lane.b32.xlu1 %v445_v63, %s2058_s8 }
 0x29a   : > { %v1946_v2 = vpop.permute.xlu0 %1945 }
 0x29b   : > { %v1948_v3 = vunpack.i.h.bf16 %v1946_v2  ;;  %v1947_v4 = vunpack.i.l.bf16 %v1946_v2 }
 0x29c   : > { %v455_v5 = vpop.permute.xlu1 %454 }
 0x29d   : > { %v1885_v7 = vpack.c.bf16 %v1948_v3, %v1947_v4 }
 0x29e   : > { %v1956_v13 = vpop.permute.xlu0 %1955 }
 0x29f   : > { %1887 = vmatpush3.bf16.xpose.msk.msra.mxu1 %vm2186_vm4, %v1885_v7  ;;  %v1958_v15 = vunpack.i.h.bf16 %v1956_v13  ;;  %v1957_v16 = vunpack.i.l.bf16 %v1956_v13 }
 0x2a0   : > { %1745 = vmatprep.subr.mxu1 %v2051_v27  ;;  %v1951_v8 = vpop.permute.xlu1 %1950 }
 0x2a1   : > { %v1953_v9 = vunpack.i.h.bf16 %v1951_v8  ;;  %v1952_v10 = vunpack.i.l.bf16 %v1951_v8  ;;  %v1899_v18 = vpack.c.bf16 %v1958_v15, %v1957_v16 }
 0x2a2   : > { %v690_v19 = vpop.permute.xlu0 %689 }
 0x2a3   : > { %v1892_v12 = vpack.c.bf16 %v1953_v9, %v1952_v10 }
 0x2a4   : > { %v698_v11 = vpop.permute.xlu1 %697 }
 0x2a6   : > { %v934_v21 = vpop.permute.xlu0 %933 }
 0x2a7   : > { %1746 = vmatpush3.xpose.msk.msra.mxu1 %vm456_vm3, %v455_v5 }
 0x2a8   : > { %1891 = vmatprep.subr.bf16.mxu1 %v2049_v24  ;;  %v688_v14 = vpop.permute.xlu1 %687 }
 0x2aa   : > { %1748 = vmatmul.mubr.msk.f32.vlgmr.msra.gmra.mrb[0].mxu1 %vm456_vm3, %v444_v0  ;;  %v924_v25 = vpop.permute.xlu0 %923 }
 0x2ab   : > { %1894 = vmatpush3.bf16.xpose.msk.msra.mxu1 %vm2186_vm4, %v1892_v12  ;;  %1750 = vmatprep.mubr.msk.f32.mxu1 %vm2050_vm2, %v2051_v27 }
 0x2ac   : > { %1775 = vmatprep.subr.mxu1 %v2051_v27  ;;  %v692_v17 = vpop.permute.xlu1 %691 }
 0x2ae   : > { %1751 = vmatmul.mubr.msk.f32.gmra.mrb[2].mxu1 %vm456_vm3, %v445_v63  ;;  %v928_v29 = vpop.permute.xlu0 %927 }
 0x2af   : > { %1753 = vmatprep.mubr.msk.f32.mxu1 %vm2050_vm2, %v2051_v27 }
 0x2b0   : > { %v1961_v20 = vpop.permute.xlu1 %1960 }
 0x2b1   : > { %v1963_v22 = vunpack.i.h.bf16 %v1961_v20  ;;  %v1962_v23 = vunpack.i.l.bf16 %v1961_v20 }
 0x2b2   : > { %1754 = vmatmul.mubr.msk.f32.gmra.mrb[4].mxu1 %vm456_vm3, %v446_v1  ;;  %v1160_v31 = vpop.permute.xlu0 %1159 }
 0x2b3   : > { %1776 = vmatpush3.xpose.msk.msra.mxu1 %vm456_vm3, %v698_v11  ;;  %1777 = vmatprep.mubr.msk.f32.mxu1 %vm2050_vm2, %v2051_v27  ;;  %v1906_v26 = vpack.c.bf16 %v1963_v22, %v1962_v23 }
 0x2b4   : > { %1898 = vmatprep.subr.bf16.mxu1 %v2049_v24  ;;  %v926_v28 = vpop.permute.xlu1 %925 }
 0x2b6   : > { %1778 = vmatmul.mubr.msk.f32.vlgmr.msra.gmra.mrb[6].mxu1 %vm456_vm3, %v688_v14  ;;  %v1164_v33 = vpop.permute.xlu0 %1163 }
 0x2b7   : > { %1901 = vmatpush3.bf16.xpose.msk.msra.mxu1 %vm2186_vm4, %v1899_v18  ;;  %1780 = vmatprep.mubr.msk.f32.mxu1 %vm2050_vm2, %v2051_v27 }
 0x2b8   : > { %1805 = vmatprep.subr.mxu1 %v2051_v27  ;;  %v1170_v30 = vpop.permute.xlu1 %1169 }
 0x2ba   : > { %1781 = vmatmul.mubr.msk.f32.gmra.mrb[8].mxu1 %vm456_vm3, %v690_v19 }
 0x2bb   : > { %1783 = vmatprep.mubr.msk.f32.mxu1 %vm2050_vm2, %v2051_v27 }
 0x2bc   : > { %v1162_v32 = vpop.permute.xlu1 %1161 }
 0x2be   : > { %1784 = vmatmul.mubr.msk.f32.gmra.mrb[10].mxu1 %vm456_vm3, %v692_v17 }
 0x2bf   : > { %1806 = vmatpush3.xpose.msk.msra.mxu1 %vm456_vm3, %v934_v21  ;;  %1807 = vmatprep.mubr.msk.f32.mxu1 %vm2050_vm2, %v2051_v27 }
 0x2c0   : > { %1905 = vmatprep.subr.bf16.mxu1 %v2049_v24 }
 0x2c2   : > { %1808 = vmatmul.mubr.msk.f32.vlgmr.msra.gmra.mrb[12].mxu1 %vm456_vm3, %v924_v25 }
 0x2c3   : > { %1908 = vmatpush3.bf16.xpose.msk.msra.mxu1 %vm2186_vm4, %v1906_v26  ;;  %1810 = vmatprep.mubr.msk.f32.mxu1 %vm2050_vm2, %v2051_v27 }
 0x2c4   : > { %1835 = vmatprep.subr.mxu1 %v2051_v27 }
 0x2c6   : > { %1811 = vmatmul.mubr.msk.f32.gmra.mrb[14].mxu1 %vm456_vm3, %v926_v28 }
 0x2c7   : > { %1813 = vmatprep.mubr.msk.f32.mxu1 %vm2050_vm2, %v2051_v27 }
 0x2ca   : > { %1814 = vmatmul.mubr.msk.f32.gmra.mrb[16].mxu1 %vm456_vm3, %v928_v29 }
 0x2cb   : > { %1836 = vmatpush3.xpose.msk.msra.mxu1 %vm456_vm3, %v1170_v30  ;;  %1837 = vmatprep.mubr.msk.f32.mxu1 %vm2050_vm2, %v2051_v27 }
 0x2cc   : > { %1912 = vmatprep.subr.bf16.mxu1 %v2049_v24 }
 0x2ce   : > { %1838 = vmatmul.mubr.msk.f32.vlgmr.msra.gmra.mrb[18].mxu1 %vm456_vm3, %v1160_v31 }
 0x2cf   : > { %1840 = vmatprep.mubr.msk.f32.mxu1 %vm2050_vm2, %v2051_v27 }
 0x2d2   : > { %1841 = vmatmul.mubr.msk.f32.gmra.mrb[20].mxu1 %vm456_vm3, %v1162_v32 }
 0x2d3   : > { %1843 = vmatprep.mubr.msk.f32.mxu1 %vm2050_vm2, %v2051_v27 }
 0x2d6   : > { %1844 = vmatmul.mubr.msk.f32.gmra.mrb[22].mxu1 %vm456_vm3, %v1164_v33 }
 0x2d7   : > { %1869 = vmatprep.mubr.msk.f32.mxu1 %vm2050_vm2, %v2051_v27 }
 0x37d   : > { %v538_v34 = vpop.f32.mrb[0].mxu1 }
 0x37e   : > { %v1749_v35 = vpop.f32.mrb[1].mxu1  ;;  %v553_v36 = vsel %vm552_vm5, %v538_v34, -inf }
 0x37f   : > { %554 = vmax.xlane.f32.xlu1 %v553_v36 }
 0x381   : > { %v543_v37 = vpop.f32.mrb[2].mxu1 }
 0x382   : > { %v1752_v38 = vpop.f32.mrb[3].mxu1  ;;  %v556_v39 = vsel %vm552_vm5, %v543_v37, -inf }
 0x383   : > { %557 = vmax.xlane.f32.xlu0 %v556_v39 }
 0x385   : > { %v548_v40 = vpop.f32.mrb[4].mxu1 }
 0x386   : > { %v1755_v41 = vpop.f32.mrb[5].mxu1  ;;  %v560_v42 = vsel %vm559_vm6, %v548_v40, -inf }
 0x387   : > { %561 = vmax.xlane.f32.xlu0 %v560_v42 }
 0x389   : > { %v777_v43 = vpop.f32.mrb[6].mxu1 }
 0x38a   : > { %v1779_v44 = vpop.f32.mrb[7].mxu1  ;;  %v791_v45 = vsel %vm552_vm5, %v777_v43, -inf }
 0x38b   : > { %792 = vmax.xlane.f32.xlu0 %v791_v45 }
 0x38d   : > { %v782_v46 = vpop.f32.mrb[8].mxu1 }
 0x38e   : > { %v1782_v47 = vpop.f32.mrb[9].mxu1  ;;  %v794_v48 = vsel %vm552_vm5, %v782_v46, -inf }
 0x38f   : > { %795 = vmax.xlane.f32.xlu1 %v794_v48 }
 0x391   : > { %v787_v49 = vpop.f32.mrb[10].mxu1 }
 0x392   : > { %v1785_v50 = vpop.f32.mrb[11].mxu1  ;;  %v797_v51 = vsel %vm559_vm6, %v787_v49, -inf }
 0x393   : > { %798 = vmax.xlane.f32.xlu0 %v797_v51 }
 0x395   : > { %v2252_v52 = vpop.f32.mrb[12].mxu1 }
 0x396   : > { %v1809_v53 = vpop.f32.mrb[13].mxu1  ;;  %v1027_v54 = vsel %vm552_vm5, %v2252_v52, -inf }
 0x397   : > { %1028 = vmax.xlane.f32.xlu1 %v1027_v54 }
 0x399   : > { %v2256_v55 = vpop.f32.mrb[14].mxu1 }
 0x39a   : > { %v1812_v56 = vpop.f32.mrb[15].mxu1  ;;  %v1030_v57 = vsel %vm552_vm5, %v2256_v55, -inf }
 0x39b   : > { %1031 = vmax.xlane.f32.xlu0 %v1030_v57 }
 0x39d   : > { %v2260_v58 = vpop.f32.mrb[16].mxu1 }
 0x39e   : > { %v1815_v60 = vpop.f32.mrb[17].mxu1  ;;  %v1033_v62 = vsel %vm559_vm6, %v2260_v58, -inf }
 0x39f   : > { %1034 = vmax.xlane.f32.xlu1 %v1033_v62 }
 0x3a1   : > { %v2264_v63 = vpop.f32.mrb[18].mxu1 }
 0x3a2   : > { %v1839_v0 = vpop.f32.mrb[19].mxu1  ;;  %v1263_v1 = vsel %vm552_vm5, %v2264_v63, -inf }
 0x3a3   : > { %1264 = vmax.xlane.f32.xlu0 %v1263_v1 }
 0x3a5   : > { %v2268_v2 = vpop.f32.mrb[20].mxu1 }
 0x3a6   : > { %v1842_v3 = vpop.f32.mrb[21].mxu1  ;;  %v1266_v4 = vsel %vm552_vm5, %v2268_v2, -inf }
 0x3a7   : > { %1267 = vmax.xlane.f32.xlu1 %v1266_v4 }
 0x3a9   : > { %v2272_v5 = vpop.f32.mrb[22].mxu1 }
 0x3aa   : > { %v1845_v6 = vpop.f32.mrb[23].mxu1  ;;  %v1269_v7 = vsel %vm559_vm6, %v2272_v5, -inf }
 0x3ab   : > { %1270 = vmax.xlane.f32.xlu0 %v1269_v7 }
 0x3b8   : > { %591 = vrot.lane.b32.xlu1 %v2173_v61, %s2059_s9 }
 0x3bc   : > { %1970 = vrot.lane.b32.xlu1 %v2171_v59, %s2060_s10 }
 0x3c1   : > { %1965 = vrot.lane.b32.xlu0 %v2171_v59, %s2059_s9  ;;  %s278_s9 = scalar_lea.vmem %s2450_s7, %s1918_s26 }
 0x40c   : > { %v555_v8 = vpop.xlane.xlu1 %554 }
 0x40d   : > { %v563_v9 = vsub.f32 %v538_v34, %v555_v8 }
 0x40f   : > { %v566_v10 = vmul.f32 1.442695, %v563_v9 }
 0x410   : > { %v558_v11 = vpop.xlane.xlu0 %557 }
 0x411   : > { %1990 = vpow2.f32 %v566_v10  ;;  %v564_v12 = vsub.f32 %v543_v37, %v558_v11 }
 0x413   : > { %v568_v13 = vmul.f32 1.442695, %v564_v12 }
 0x414   : > { %v562_v14 = vpop.xlane.xlu0 %561 }
 0x415   : > { %1992 = vpow2.f32 %v568_v13  ;;  %v565_v15 = vsub.f32 %v548_v40, %v562_v14 }
 0x417   : > { %v570_v16 = vmul.f32 1.442695, %v565_v15 }
 0x418   : > { %v793_v17 = vpop.xlane.xlu0 %792 }
 0x419   : > { %1994 = vpow2.f32 %v570_v16  ;;  %v800_v18 = vsub.f32 %v777_v43, %v793_v17 }
 0x41b   : > { %v2280_v19 = vpop.eup %1990  ;;  %v803_v20 = vmul.f32 1.442695, %v800_v18 }
 0x41c   : > { %v796_v21 = vpop.xlane.xlu1 %795  ;;  %v572_v22 = vsel %vm552_vm5, %v2280_v19, 0.0 }
 0x41d   : > { %1996 = vpow2.f32 %v803_v20  ;;  %v801_v23 = vsub.f32 %v782_v46, %v796_v21  ;;  %573 = vadd.xlane.f32.xlu1 %v572_v22 }
 0x41f   : > { %v2284_v25 = vpop.eup %1992  ;;  %v805_v26 = vmul.f32 1.442695, %v801_v23 }
 0x420   : > { %v799_v28 = vpop.xlane.xlu0 %798  ;;  %v575_v29 = vsel %vm552_vm5, %v2284_v25, 0.0 }
 0x421   : > { %1998 = vpow2.f32 %v805_v26  ;;  %v802_v30 = vsub.f32 %v787_v49, %v799_v28  ;;  %576 = vadd.xlane.f32.xlu0 %v575_v29 }
 0x423   : > { %v2288_v31 = vpop.eup %1994  ;;  %v807_v32 = vmul.f32 1.442695, %v802_v30 }
 0x424   : > { %v1029_v33 = vpop.xlane.xlu1 %1028  ;;  %v578_v34 = vsel %vm559_vm6, %v2288_v31, 0.0 }
 0x425   : > { %2000 = vpow2.f32 %v807_v32  ;;  %v1036_v35 = vsub.f32 %v2252_v52, %v1029_v33  ;;  %579 = vadd.xlane.f32.xlu1 %v578_v34 }
 0x427   : > { %v2293_v36 = vpop.eup %1996  ;;  %v1039_v37 = vmul.f32 1.442695, %v1036_v35 }
 0x428   : > { %v1032_v38 = vpop.xlane.xlu0 %1031  ;;  %v809_v39 = vsel %vm552_vm5, %v2293_v36, 0.0 }
 0x429   : > { %2002 = vpow2.f32 %v1039_v37  ;;  %v1037_v40 = vsub.f32 %v2256_v55, %v1032_v38  ;;  %810 = vadd.xlane.f32.xlu0 %v809_v39 }
 0x42b   : > { %v2298_v41 = vpop.eup %1998  ;;  %v1041_v42 = vmul.f32 1.442695, %v1037_v40 }
 0x42c   : > { %v1035_v43 = vpop.xlane.xlu1 %1034  ;;  %v812_v44 = vsel %vm552_vm5, %v2298_v41, 0.0 }
 0x42d   : > { %2004 = vpow2.f32 %v1041_v42  ;;  %v1038_v45 = vsub.f32 %v2260_v58, %v1035_v43  ;;  %813 = vadd.xlane.f32.xlu1 %v812_v44 }
 0x42f   : > { %v2303_v46 = vpop.eup %2000  ;;  %v1043_v47 = vmul.f32 1.442695, %v1038_v45 }
 0x430   : > { %v1265_v48 = vpop.xlane.xlu0 %1264  ;;  %v815_v49 = vsel %vm559_vm6, %v2303_v46, 0.0 }
 0x431   : > { %2006 = vpow2.f32 %v1043_v47  ;;  %v1272_v50 = vsub.f32 %v2264_v63, %v1265_v48  ;;  %816 = vadd.xlane.f32.xlu1 %v815_v49 }
 0x433   : > { %v2308_v51 = vpop.eup %2002  ;;  %v1275_v52 = vmul.f32 1.442695, %v1272_v50 }
 0x434   : > { %v1045_v53 = vsel %vm552_vm5, %v2308_v51, 0.0  ;;  %v1268_v1 = vpop.xlane.xlu1 %1267 }
 0x435   : > { %2008 = vpow2.f32 %v1275_v52  ;;  %1046 = vadd.xlane.f32.xlu1 %v1045_v53  ;;  %v1273_v7 = vsub.f32 %v2268_v2, %v1268_v1 }
 0x437   : > { %v2312_v54 = vpop.eup %2004  ;;  %v1277_v8 = vmul.f32 1.442695, %v1273_v7 }
 0x438   : > { %v1271_v55 = vpop.xlane.xlu0 %1270  ;;  %v1048_v56 = vsel %vm552_vm5, %v2312_v54, 0.0  ;;  %v592_v6 = vpop.permute.xlu1 %591 }
 0x439   : > { %1049 = vadd.xlane.f32.xlu0 %v1048_v56  ;;  %v1274_v9 = vsub.f32 %v2272_v5, %v1271_v55  ;;  %2010 = vpow2.f32 %v1277_v8 }
 0x43b   : > { %v2316_v57 = vpop.eup %2006  ;;  %v1279_v10 = vmul.f32 1.442695, %v1274_v9 }
 0x43c   : > { %v1966_v58 = vpop.permute.xlu0 %1965  ;;  %v1051_v60 = vsel %vm559_vm6, %v2316_v57, 0.0  ;;  %v1971_v2 = vpop.permute.xlu1 %1970 }
 0x43d   : > { %v1968_v62 = vunpack.i.h.bf16 %v1966_v58  ;;  %1052 = vadd.xlane.f32.xlu1 %v1051_v60  ;;  %v1967_v63 = vunpack.i.l.bf16 %v1966_v58  ;;  %2012 = vpow2.f32 %v1279_v10  ;;  %v1973_v17 = vunpack.i.h.bf16 %v1971_v2 }
 0x43e   : > { %v1972_v18 = vunpack.i.l.bf16 %v1971_v2 }
 0x43f   : > { %v2320_v0 = vpop.eup %2008  ;;  %v1889_v3 = vpack.c.bf16 %v1968_v62, %v1967_v63 }
 0x440   : > { %v1281_v4 = vsel %vm552_vm5, %v2320_v0, 0.0  ;;  %v1896_v22 = vpack.c.bf16 %v1973_v17, %v1972_v18  ;;  %v1444_v17 = vld [vmem:[%s2448_s5 + $0x10] sm:$0xff]  ;;  %v1445_v18 = vld [vmem:[%s2448_s5 + $0x18] sm:$0xff] }
 0x441   : > { %1282 = vadd.xlane.f32.xlu0 %v1281_v4  ;;  %1890 = vmatpush3.bf16.msra.mxu0 %v1889_v3 }
 0x442   : > { %1760 = vmatprep.subr.mxu0 %v2051_v27 }
 0x443   : > { %v2332_v11 = vpop.eup %2010 }
 0x444   : > { %v1284_v12 = vsel %vm552_vm5, %v2332_v11, 0.0 }
 0x445   : > { %1761 = vmatpush3.msk.msra.mxu0 %vm604_vm7, %v592_v6 }
 0x446   : > { %1895 = vmatprep.subr.bf16.mxu0 %v2049_v24 }
 0x447   : > { %v2336_v13 = vpop.eup %2012 }
 0x448   : > { %v1287_v14 = vsel %vm559_vm6, %v2336_v13, 0.0 }
 0x44e   : > { %1975 = vrot.lane.b32.xlu1 %v2171_v59, %s2061_s11 }
 0x457   : > { %828 = vrot.lane.b32.xlu0 %v2173_v61, %s2060_s10 }
 0x472   : > { %1285 = vadd.xlane.f32.xlu1 %v1284_v12 }
 0x476   : > { %1288 = vadd.xlane.f32.xlu0 %v1287_v14 }
 0x483   : > { %1064 = vrot.lane.b32.xlu1 %v2173_v61, %s2061_s11 }
 0x487   : > { %1980 = vrot.lane.b32.xlu1 %v2171_v59, %s2062_s12 }
 0x48b   : > { %1300 = vrot.lane.b32.xlu1 %v2173_v61, %s2062_s12 }
 0x4aa   : > { %v574_v5 = vpop.xlane.xlu1 %573 }
 0x4ab   : > { %2014 = vrcp.f32 %v574_v5 }
 0x4ae   : > { %v577_v15 = vpop.xlane.xlu0 %576 }
 0x4af   : > { %2016 = vrcp.f32 %v577_v15  ;;  %v1443_v15 = vld [vmem:[%s2448_s5 + $0x8] sm:$0xff] }
 0x4b2   : > { %v580_v16 = vpop.xlane.xlu1 %579 }
 0x4b3   : > { %2018 = vrcp.f32 %v580_v16 }
 0x4b5   : > { %v2015_v20 = vpop.eup %2014 }
 0x4b6   : > { %v584_v21 = vmul.f32 %v2015_v20, %v2280_v19  ;;  %v811_v29 = vpop.xlane.xlu0 %810  ;;  %v1916_v20 = vpack.c.bf16 %v1445_v18, %v1444_v17 }
 0x4b7   : > { %2020 = vrcp.f32 %v811_v29 }
 0x4b8   : > { %1763 = vmatmul.mubr.msk.f32.vlgmr.msra.gmra.mrb[6].mxu0 %vm552_vm5, %v584_v21 }
 0x4b9   : > { %v2017_v23 = vpop.eup %2016  ;;  %1897 = vmatpush3.bf16.msra.mxu0 %v1896_v22  ;;  %1765 = vmatprep.mubr.msk.f32.mxu0 %vm2050_vm2, %v2051_v27 }
 0x4ba   : > { %v814_v59 = vpop.xlane.xlu1 %813  ;;  %v585_v61 = vmul.f32 %v2017_v23, %v2284_v25  ;;  %1790 = vmatprep.subr.mxu0 %v2051_v27 }
 0x4bb   : > { %2022 = vrcp.f32 %v814_v59 }
 0x4bc   : > { %1766 = vmatmul.mubr.msk.f32.gmra.mrb[8].mxu0 %vm552_vm5, %v585_v61 }
 0x4bd   : > { %v2019_v26 = vpop.eup %2018  ;;  %1768 = vmatprep.mubr.msk.f32.mxu0 %vm2050_vm2, %v2051_v27 }
 0x4be   : > { %v586_v19 = vmul.f32 %v2019_v26, %v2288_v31  ;;  %v817_v28 = vpop.xlane.xlu1 %816 }
 0x4bf   : > { %2024 = vrcp.f32 %v817_v28 }
 0x4c0   : > { %1769 = vmatmul.mubr.msk.f32.gmra.mrb[10].mxu0 %vm552_vm5, %v586_v19 }
 0x4c1   : > { %1792 = vmatprep.mubr.msk.f32.mxu0 %vm2050_vm2, %v2051_v27  ;;  %v2021_v35 = vpop.eup %2020 }
 0x4c2   : > { %v1047_v30 = vpop.xlane.xlu1 %1046  ;;  %v821_v31 = vmul.f32 %v2021_v35, %v2293_v36 }
 0x4c3   : > { %2026 = vrcp.f32 %v1047_v30 }
 0x4c5   : > { %v2023_v40 = vpop.eup %2022 }
 0x4c6   : > { %v1050_v25 = vpop.xlane.xlu0 %1049  ;;  %v822_v43 = vmul.f32 %v2023_v40, %v2298_v41 }
 0x4c7   : > { %2028 = vrcp.f32 %v1050_v25 }
 0x4c9   : > { %v2025_v44 = vpop.eup %2024 }
 0x4ca   : > { %v1053_v32 = vpop.xlane.xlu1 %1052  ;;  %v823_v36 = vmul.f32 %v2025_v44, %v2303_v46 }
 0x4cb   : > { %2030 = vrcp.f32 %v1053_v32 }
 0x4cd   : > { %v2027_v41 = vpop.eup %2026 }
 0x4ce   : > { %v1976_v33 = vpop.permute.xlu1 %1975  ;;  %v1283_v34 = vpop.xlane.xlu0 %1282  ;;  %v1057_v47 = vmul.f32 %v2027_v41, %v2308_v51 }
 0x4cf   : > { %v1978_v37 = vunpack.i.h.bf16 %v1976_v33  ;;  %v1977_v38 = vunpack.i.l.bf16 %v1976_v33  ;;  %2032 = vrcp.f32 %v1283_v34 }
 0x4d1   : > { %v1903_v42 = vpack.c.bf16 %v1978_v37, %v1977_v38  ;;  %v2029_v49 = vpop.eup %2028 }
 0x4d2   : > { %v829_v39 = vpop.permute.xlu0 %828  ;;  %v1058_v52 = vmul.f32 %v2029_v49, %v2312_v54 }
 0x4d3   : > { %1791 = vmatpush3.msk.msra.mxu0 %vm604_vm7, %v829_v39 }
 0x4d4   : > { %1793 = vmatmul.mubr.msk.f32.vlgmr.msra.gmra.mrb[12].mxu0 %vm552_vm5, %v821_v31  ;;  %1902 = vmatprep.subr.bf16.mxu0 %v2049_v24 }
 0x4d5   : > { %1904 = vmatpush3.bf16.msra.mxu0 %v1903_v42  ;;  %1795 = vmatprep.mubr.msk.f32.mxu0 %vm2050_vm2, %v2051_v27  ;;  %v2031_v53 = vpop.eup %2030 }
 0x4d6   : > { %1820 = vmatprep.subr.mxu0 %v2051_v27  ;;  %v1059_v58 = vmul.f32 %v2031_v53, %v2316_v57 }
 0x4d8   : > { %1796 = vmatmul.mubr.msk.f32.gmra.mrb[14].mxu0 %vm552_vm5, %v822_v43 }
 0x4d9   : > { %1798 = vmatprep.mubr.msk.f32.mxu0 %vm2050_vm2, %v2051_v27  ;;  %v2033_v60 = vpop.eup %2032 }
 0x4da   : > { %v1293_v54 = vmul.f32 %v2033_v60, %v2320_v0  ;;  %v2039_v60 = vld [vmem:[%s2122_s29 + $0x8] sm:$0xff] }
 0x4dc   : > { %1799 = vmatmul.mubr.msk.f32.gmra.mrb[16].mxu0 %vm552_vm5, %v823_v36 }
 0x4dd   : > { %1822 = vmatprep.mubr.msk.f32.mxu0 %vm2050_vm2, %v2051_v27 }
 0x4ff   : > { %v1286_v45 = vpop.xlane.xlu1 %1285 }
 0x500   : > { %2034 = vrcp.f32 %v1286_v45 }
 0x503   : > { %v1065_v48 = vpop.permute.xlu1 %1064  ;;  %v1289_v46 = vpop.xlane.xlu0 %1288 }
 0x504   : > { %1821 = vmatpush3.msk.msra.mxu0 %vm604_vm7, %v1065_v48  ;;  %2036 = vrcp.f32 %v1289_v46  ;;  %v1656_v46 = vld [vmem:[%s2449_s6] ss:$0 sm:$0xff] }
 0x505   : > { %1823 = vmatmul.mubr.msk.f32.vlgmr.msra.gmra.mrb[18].mxu0 %vm552_vm5, %v1057_v47  ;;  %1909 = vmatprep.subr.bf16.mxu0 %v2049_v24 }
 0x506   : > { %1825 = vmatprep.mubr.msk.f32.mxu0 %vm2050_vm2, %v2051_v27 }
 0x507   : > { %v1981_v50 = vpop.permute.xlu1 %1980 }
 0x508   : > { %v1983_v55 = vunpack.i.h.bf16 %v1981_v50  ;;  %v1982_v56 = vunpack.i.l.bf16 %v1981_v50 }
 0x509   : > { %1826 = vmatmul.mubr.msk.f32.gmra.mrb[20].mxu0 %vm552_vm5, %v1058_v52 }
 0x50a   : > { %v1910_v51 = vpack.c.bf16 %v1983_v55, %v1982_v56  ;;  %1828 = vmatprep.mubr.msk.f32.mxu0 %vm2050_vm2, %v2051_v27  ;;  %v2035_v63 = vpop.eup %2034 }
 0x50b   : > { %v1301_v62 = vpop.permute.xlu1 %1300  ;;  %v1294_v57 = vmul.f32 %v2035_v63, %v2332_v11 }
 0x50c   : > { %1911 = vmatpush3.bf16.msra.mxu0 %v1910_v51 }
 0x50d   : > { %1829 = vmatmul.mubr.msk.f32.gmra.mrb[22].mxu0 %vm552_vm5, %v1059_v58  ;;  %1850 = vmatprep.subr.mxu0 %v2051_v27 }
 0x50e   : > { %1852 = vmatprep.mubr.msk.f32.mxu0 %vm2050_vm2, %v2051_v27  ;;  %v2037_v1 = vpop.eup %2036 }
 0x50f   : > { %v1295_v3 = vmul.f32 %v2037_v1, %v2336_v13  ;;  %v1442_v13 = vld [vmem:[%s2448_s5] sm:$0xff]  ;;  %v2040_v1 = vld [vmem:[%s2122_s29 + $0x10] sm:$0x1] }
 0x510   : > { %1851 = vmatpush3.msk.msra.mxu0 %vm604_vm7, %v1301_v62  ;;  %v1913_v16 = vpack.c.bf16 %v1443_v15, %v1442_v13 }
 0x511   : > { %1853 = vmatmul.mubr.msk.f32.vlgmr.msra.gmra.mrb[24].mxu0 %vm552_vm5, %v1293_v54 }
 0x512   : > { %1855 = vmatprep.mubr.msk.f32.mxu0 %vm2050_vm2, %v2051_v27  ;;  %1914 = vmatpush3.bf16.msra.mxu1 %v1913_v16 }
 0x513   : > { %1915 = vmatprep.subr.bf16.mxu1 %v2049_v24 }
 0x515   : > { %1856 = vmatmul.mubr.msk.f32.gmra.mrb[26].mxu0 %vm552_vm5, %v1294_v57 }
 0x516   : > { %1858 = vmatprep.mubr.msk.f32.mxu0 %vm2050_vm2, %v2051_v27  ;;  %1917 = vmatpush3.bf16.msra.mxu1 %v1916_v20 }
 0x519   : > { %1859 = vmatmul.mubr.msk.f32.gmra.mrb[28].mxu0 %vm552_vm5, %v1295_v3 }
 0x58b   : > { %v673_v0 = vpop.f32.mrb[6].mxu0 }
 0x58c   : > { %v1764_v4 = vpop.f32.mrb[7].mxu0 }
 0x58f   : > { %v678_v6 = vpop.f32.mrb[8].mxu0 }
 0x590   : > { %v1767_v7 = vpop.f32.mrb[9].mxu0 }
 0x593   : > { %v683_v8 = vpop.f32.mrb[10].mxu0 }
 0x594   : > { %v1770_v9 = vpop.f32.mrb[11].mxu0 }
 0x5a7   : > { %v909_v10 = vpop.f32.mrb[12].mxu0 }
 0x5a8   : > { %1398 = vrot.lane.b32.xlu1 %v909_v10, %s2063_s13  ;;  %v1794_v11 = vpop.f32.mrb[13].mxu0 }
 0x5ab   : > { %v914_v12 = vpop.f32.mrb[14].mxu0 }
 0x5ac   : > { %1400 = vrot.lane.b32.xlu0 %v914_v12, %s2063_s13  ;;  %v1797_v14 = vpop.f32.mrb[15].mxu0 }
 0x5af   : > { %v919_v2 = vpop.f32.mrb[16].mxu0 }
 0x5b0   : > { %1402 = vrot.lane.b32.xlu1 %v919_v2, %s2063_s13  ;;  %v1800_v5 = vpop.f32.mrb[17].mxu0 }
 0x5d8   : > { %v1145_v21 = vpop.f32.mrb[18].mxu0 }
 0x5d9   : > { %1410 = vrot.lane.b32.xlu1 %v1145_v21, %s2064_s22  ;;  %v1824_v22 = vpop.f32.mrb[19].mxu0 }
 0x5dc   : > { %v1150_v23 = vpop.f32.mrb[20].mxu0 }
 0x5dd   : > { %1412 = vrot.lane.b32.xlu1 %v1150_v23, %s2064_s22  ;;  %v1827_v59 = vpop.f32.mrb[21].mxu0 }
 0x5e0   : > { %v1155_v61 = vpop.f32.mrb[22].mxu0 }
 0x5e1   : > { %1414 = vrot.lane.b32.xlu1 %v1155_v61, %s2064_s22  ;;  %v1830_v24 = vpop.f32.mrb[23].mxu0 }
 0x5e4   : > { %v1381_v26 = vpop.f32.mrb[24].mxu0 }
 0x5e5   : > { %1422 = vrot.lane.b32.xlu1 %v1381_v26, %s2065_s23  ;;  %v1854_v19 = vpop.f32.mrb[25].mxu0 }
 0x5e8   : > { %v1386_v28 = vpop.f32.mrb[26].mxu0 }
 0x5e9   : > { %1424 = vrot.lane.b32.xlu1 %v1386_v28, %s2065_s23  ;;  %v1857_v29 = vpop.f32.mrb[27].mxu0 }
 0x5ec   : > { %v1391_v30 = vpop.f32.mrb[28].mxu0 }
 0x5ed   : > { %1426 = vrot.lane.b32.xlu1 %v1391_v30, %s2065_s23  ;;  %v1860_v25 = vpop.f32.mrb[29].mxu0 }
 0x61a   : > { %v1399_v32 = vpop.permute.xlu1 %1398 }
 0x61b   : > { %v1431_v38 = vsel %vm456_vm3, %v673_v0, %v1399_v32 }
 0x61e   : > { %v1401_v31 = vpop.permute.xlu0 %1400 }
 0x61f   : > { %v1432_v43 = vsel %vm456_vm3, %v678_v6, %v1401_v31 }
 0x622   : > { %v1403_v33 = vpop.permute.xlu1 %1402 }
 0x623   : > { %v1433_v41 = vsel %vm456_vm3, %v683_v8, %v1403_v33 }
 0x64b   : > { %v1411_v34 = vpop.permute.xlu1 %1410 }
 0x64c   : > { %v1435_v39 = vsel %vm1434_vm8, %v1431_v38, %v1411_v34 }
 0x64f   : > { %v1413_v35 = vpop.permute.xlu1 %1412 }
 0x650   : > { %v1436_v44 = vsel %vm1434_vm8, %v1432_v43, %v1413_v35 }
 0x653   : > { %v1415_v37 = vpop.permute.xlu1 %1414 }
 0x654   : > { %v1437_v47 = vsel %vm1434_vm8, %v1433_v41, %v1415_v37 }
 0x657   : > { %v1423_v40 = vpop.permute.xlu1 %1422 }
 0x658   : > { %v1439_v42 = vsel %vm1438_vm9, %v1435_v39, %v1423_v40 }
 0x659   : > { %1870 = vmatmul.mubr.msk.f32.vlgmr.msra.gmra.mrb[24].mxu1 %vm284_vm0, %v1439_v42 }
 0x65a   : > { %1872 = vmatprep.mubr.msk.f32.mxu1 %vm2050_vm2, %v2051_v27 }
 0x65b   : > { %v1425_v36 = vpop.permute.xlu1 %1424 }
 0x65c   : > { %v1440_v45 = vsel %vm1438_vm9, %v1436_v44, %v1425_v36 }
 0x65d   : > { %1873 = vmatmul.mubr.msk.f32.gmra.mrb[26].mxu1 %vm284_vm0, %v1440_v45 }
 0x65e   : > { %1875 = vmatprep.mubr.msk.f32.mxu1 %vm2050_vm2, %v2051_v27  ;;  %v2038_v27 = vld [vmem:[%s2122_s29] sm:$0xff] }
 0x65f   : > { %v1427_v48 = vpop.permute.xlu1 %1426 }
 0x660   : > { %v1441_v49 = vsel %vm1438_vm9, %v1437_v47, %v1427_v48 }
 0x661   : > { %1876 = vmatmul.mubr.msk.f32.gmra.mrb[28].mxu1 %vm284_vm0, %v1441_v49 }
 0x72c   : > { %v1528_v50 = vpop.f32.mrb[24].mxu1 }
 0x72d   : > { %v1529_v52 = vadd.f32 %v1656_v46, %v1528_v50  ;;  %v1871_v53 = vpop.f32.mrb[25].mxu1 }
 0x72f   : > { %v1542_v55 = vadd.f32 %v2038_v27, %v1529_v52 }
 0x730   : > { %v1533_v56 = vpop.f32.mrb[26].mxu1 }
 0x731   : > { %1545 = vst.msk [vmem:[%s278_s9] sm:$0xff] %vm284_vm0, %v1542_v55  ;;  %v1534_v51 = vadd.f32 %v1656_v46, %v1533_v56  ;;  %v1874_v58 = vpop.f32.mrb[27].mxu1 }
 0x733   : > { %v1543_v54 = vadd.f32 %v2039_v60, %v1534_v51 }
 0x734   : > { %v1538_v62 = vpop.f32.mrb[28].mxu1 }
 0x735   : > { %1546 = vst.msk [vmem:[%s278_s9 + $0x8] sm:$0xff] %vm284_vm0, %v1543_v54  ;;  %v1539_v63 = vadd.f32 %v1656_v46, %v1538_v62  ;;  %v1877_v57 = vpop.f32.mrb[29].mxu1 }
 0x737   : > { %v1544_v3 = vadd.f32 %v2040_v1, %v1539_v63 }
 0x739   : > { %1547 = vst.msk [vmem:[%s278_s9 + $0x10] sm:$0x1] %vm291_vm1, %v1544_v3 }
 0x73a PF: > { %s17_s24 = sadd.s32 1, %s2047_s24  }
 0x73b   : > { %p14_p4 = scmp.ge.s32.totalorder %s17_s24, 4  }
 0x73d   :  { %16 = sbr.rel (!%p14_p4) target bundleno = 1 (0x1), region = 78 }

</bundles_post_ra>
